<compile_context>
chip_gen: v5e
topology: v5e:2x2
jax: 0.10.0
libtpu: 0.0.40
codegen_flags: <defaults>
</compile_context>

<pallas_src>
import jax
import jax.numpy as jnp
from jax.experimental import pallas as pl
from jax.experimental.pallas import tpu as pltpu

D_IN = 20          # latent dim (fixed by the module)
D_HID = 400        # fc1 out
D_OUT = 784        # fc2 out (28*28)
D_OUT_PAD = 896    # 7 * 128 — lane-dense padded fc2 width


def decoder_kernel(x_ref, w1_ref, b1_ref, w2_ref, b2_ref, out_ref):
    # fc1: (TB,20) @ (20,400) — bf16 MXU inputs, f32 accumulation.
    h = jnp.dot(x_ref[...].astype(jnp.bfloat16), w1_ref[...],
                preferred_element_type=jnp.float32)
    h = jnp.maximum(h + b1_ref[...], 0.0)          # f32 bias-add + ReLU
    # fc2: (TB,400) @ (400,896) — bf16 MXU inputs, f32 accumulation.
    o = jnp.dot(h.astype(jnp.bfloat16), w2_ref[...],
                preferred_element_type=jnp.float32)
    o = o + b2_ref[...]                            # f32 bias-add
    out_ref[...] = jax.nn.sigmoid(o).astype(out_ref.dtype)


def _round_up(v, m):
    return ((v + m - 1) // m) * m


def decoder_min(x, w1_bf16, b1, w2p_bf16, b2p, *, max_tb=256):
    """x: (B, 20) f32.  w1: (20,400) bf16, b1: (1,400) f32,
    w2p: (400,896) bf16 (lane-padded), b2p: (1,896) f32."""
    B = x.shape[0]
    TB = min(max_tb, _round_up(B, 8))      # batch tile, multiple of 8 sublanes
    B_pad = _round_up(B, TB)
    if B_pad != B:
        x = jnp.pad(x, ((0, B_pad - B), (0, 0)))

    out = pl.pallas_call(
        decoder_kernel,
        out_shape=jax.ShapeDtypeStruct((B_pad, D_OUT_PAD), jnp.float32),
        grid=(B_pad // TB,),
        in_specs=[
            pl.BlockSpec((TB, D_IN), lambda i: (i, 0)),          # x: tiled on batch
            pl.BlockSpec((D_IN, D_HID), lambda i: (0, 0)),       # w1: resident
            pl.BlockSpec((1, D_HID), lambda i: (0, 0)),          # b1: resident
            pl.BlockSpec((D_HID, D_OUT_PAD), lambda i: (0, 0)),  # w2: resident
            pl.BlockSpec((1, D_OUT_PAD), lambda i: (0, 0)),      # b2: resident
        ],
        out_specs=pl.BlockSpec((TB, D_OUT_PAD), lambda i: (i, 0)),
        compiler_params=pltpu.CompilerParams(
            dimension_semantics=("parallel",)),
    )(x, w1_bf16, b1, w2p_bf16, b2p)

    # drop lane padding + batch padding, reshape to NCHW like PyTorch .view()
    return out[:B, :D_OUT].reshape(B, 1, 28, 28)


def init_params(key):
    # PyTorch nn.Linear default init: U(-1/sqrt(fan_in), 1/sqrt(fan_in)),
    # reproduced deterministically (synthetic weights, no checkpoint).
    k1, k2, k3, k4 = jax.random.split(key, 4)
    bound1 = 1.0 / jnp.sqrt(float(D_IN))
    bound2 = 1.0 / jnp.sqrt(float(D_HID))
    # stored transposed vs torch (in_features, out_features) so kernel does x @ W
    w1 = jax.random.uniform(k1, (D_IN, D_HID), jnp.float32, -bound1, bound1)
    b1 = jax.random.uniform(k2, (1, D_HID), jnp.float32, -bound1, bound1)
    w2 = jax.random.uniform(k3, (D_HID, D_OUT), jnp.float32, -bound2, bound2)
    b2 = jax.random.uniform(k4, (1, D_OUT), jnp.float32, -bound2, bound2)
    # bf16 weight storage (halves weight HBM traffic); biases stay f32.
    w1_bf16 = w1.astype(jnp.bfloat16)
    w2p_bf16 = jnp.pad(w2, ((0, 0), (0, D_OUT_PAD - D_OUT))).astype(jnp.bfloat16)
    b2p = jnp.pad(b2, ((0, 0), (0, D_OUT_PAD - D_OUT)))
    return w1_bf16, b1, w2p_bf16, b2p


if __name__ == "__main__":
    key = jax.random.PRNGKey(0)
    kp, kx = jax.random.split(key)
    w1_bf16, b1, w2p_bf16, b2p = init_params(kp)

    B = 8  # small batch; latent dim fixed at 20 by the module
    x = jax.random.normal(kx, (B, D_IN), jnp.float32)

    y = decoder_min(x, w1_bf16, b1, w2p_bf16, b2p)
    y = jax.block_until_ready(y)

    # reference check in plain JAX, replicating the kernel's bf16/f32 mixed path
    xb = x.astype(jnp.bfloat16)
    h_ref = jnp.maximum(
        jnp.dot(xb, w1_bf16, preferred_element_type=jnp.float32) + b1, 0.0)
    o_ref = jnp.dot(h_ref.astype(jnp.bfloat16), w2p_bf16,
                    preferred_element_type=jnp.float32) + b2p
    ref = jax.nn.sigmoid(o_ref)[:, :D_OUT].reshape(B, 1, 28, 28)

    assert y.shape == (B, 1, 28, 28)
    assert jnp.allclose(y, ref, atol=2e-4, rtol=2e-4)
    print("KERNEL_OK")
</pallas_src>

<mosaic_0001>
module attributes {stable_mosaic.version = 11 : i64} {
  func.func @decoder_kernel(%arg0: i32, %arg1: memref<8x20xf32, #tpu.memory_space<vmem>>, %arg2: memref<20x400xbf16, #tpu.memory_space<vmem>>, %arg3: memref<1x400xf32, #tpu.memory_space<vmem>>, %arg4: memref<400x896xbf16, #tpu.memory_space<vmem>>, %arg5: memref<1x896xf32, #tpu.memory_space<vmem>>, %arg6: memref<8x896xf32, #tpu.memory_space<vmem>>) attributes {dimension_semantics = [#tpu.dimension_semantics<parallel>], iteration_bounds = array<i64: 1>, scalar_prefetch = 0 : i64, scratch_operands = 0 : i64, tpu.core_type = #tpu.core_type<tc>, window_params = [{transform_indices = @transform_0, window_bounds = array<i64: 8, 20>}, {pipeline_mode = #tpu.pipeline_mode<synchronous>, transform_indices = @transform_1, window_bounds = array<i64: 20, 400>}, {pipeline_mode = #tpu.pipeline_mode<synchronous>, transform_indices = @transform_2, window_bounds = array<i64: 1, 400>}, {pipeline_mode = #tpu.pipeline_mode<synchronous>, transform_indices = @transform_3, window_bounds = array<i64: 400, 896>}, {pipeline_mode = #tpu.pipeline_mode<synchronous>, transform_indices = @transform_4, window_bounds = array<i64: 1, 896>}, {transform_indices = @transform_5, window_bounds = array<i64: 8, 896>}]} {
    %c0 = arith.constant 0 : index
    %c0_0 = arith.constant 0 : index
    %0 = vector.load %arg1[%c0, %c0_0] : memref<8x20xf32, #tpu.memory_space<vmem>>, vector<8x20xf32>
    %1 = arith.truncf %0 : vector<8x20xf32> to vector<8x20xbf16>
    %c0_1 = arith.constant 0 : index
    %c0_2 = arith.constant 0 : index
    %2 = vector.load %arg2[%c0_1, %c0_2] : memref<20x400xbf16, #tpu.memory_space<vmem>>, vector<20x400xbf16>
    %cst = arith.constant dense<0.000000e+00> : vector<8x400xf32>
    %3 = tpu.matmul %1, %2, %cst {dimension_numbers = #tpu.dot_dimension_numbers<[1], [0], [0], [1], [0, 0, 1, 1], [], []>} : vector<8x20xbf16>, vector<20x400xbf16>, vector<8x400xf32> -> vector<8x400xf32>
    %c0_3 = arith.constant 0 : index
    %c0_4 = arith.constant 0 : index
    %4 = vector.load %arg3[%c0_3, %c0_4] : memref<1x400xf32, #tpu.memory_space<vmem>>, vector<1x400xf32>
    %5 = vector.broadcast %4 : vector<1x400xf32> to vector<8x400xf32>
    %6 = arith.addf %3, %5 : vector<8x400xf32>
    %cst_5 = arith.constant 0.000000e+00 : f32
    %7 = vector.broadcast %cst_5 : f32 to vector<8x400xf32>
    %8 = arith.maximumf %6, %7 : vector<8x400xf32>
    %9 = arith.truncf %8 : vector<8x400xf32> to vector<8x400xbf16>
    %c0_6 = arith.constant 0 : index
    %c0_7 = arith.constant 0 : index
    %10 = vector.load %arg4[%c0_6, %c0_7] : memref<400x896xbf16, #tpu.memory_space<vmem>>, vector<400x896xbf16>
    %cst_8 = arith.constant dense<0.000000e+00> : vector<8x896xf32>
    %11 = tpu.matmul %9, %10, %cst_8 {dimension_numbers = #tpu.dot_dimension_numbers<[1], [0], [0], [1], [0, 0, 1, 1], [], []>} : vector<8x400xbf16>, vector<400x896xbf16>, vector<8x896xf32> -> vector<8x896xf32>
    %c0_9 = arith.constant 0 : index
    %c0_10 = arith.constant 0 : index
    %12 = vector.load %arg5[%c0_9, %c0_10] : memref<1x896xf32, #tpu.memory_space<vmem>>, vector<1x896xf32>
    %13 = vector.broadcast %12 : vector<1x896xf32> to vector<8x896xf32>
    %14 = arith.addf %11, %13 : vector<8x896xf32>
    %15 = arith.negf %14 : vector<8x896xf32>
    %16 = math.exp %15 : vector<8x896xf32>
    %cst_11 = arith.constant 1.000000e+00 : f32
    %17 = vector.broadcast %cst_11 : f32 to vector<8x896xf32>
    %18 = arith.addf %17, %16 : vector<8x896xf32>
    %19 = arith.divf %17, %18 : vector<8x896xf32>
    %c0_12 = arith.constant 0 : index
    %c0_13 = arith.constant 0 : index
    %20 = vector.load %arg6[%c0_12, %c0_13] : memref<8x896xf32, #tpu.memory_space<vmem>>, vector<8x896xf32>
    tpu.vector_store %arg6[%c0_12, %c0_13], %19 {strides = array<i32>} : memref<8x896xf32, #tpu.memory_space<vmem>>, vector<8x896xf32>,
    return
  }
  func.func @transform_0(%arg0: i32) -> (i32, i32) {
    %c0_i32 = arith.constant 0 : i32
    %c0_i32_0 = arith.constant 0 : i32
    return %arg0, %c0_i32 : i32, i32
  }
  func.func @transform_1(%arg0: i32) -> (i32, i32) {
    %c0_i32 = arith.constant 0 : i32
    %c0_i32_0 = arith.constant 0 : i32
    %c0_i32_1 = arith.constant 0 : i32
    return %c0_i32, %c0_i32_0 : i32, i32
  }
  func.func @transform_2(%arg0: i32) -> (i32, i32) {
    %c0_i32 = arith.constant 0 : i32
    %c0_i32_0 = arith.constant 0 : i32
    %c0_i32_1 = arith.constant 0 : i32
    return %c0_i32, %c0_i32_0 : i32, i32
  }
  func.func @transform_3(%arg0: i32) -> (i32, i32) {
    %c0_i32 = arith.constant 0 : i32
    %c0_i32_0 = arith.constant 0 : i32
    %c0_i32_1 = arith.constant 0 : i32
    return %c0_i32, %c0_i32_0 : i32, i32
  }
  func.func @transform_4(%arg0: i32) -> (i32, i32) {
    %c0_i32 = arith.constant 0 : i32
    %c0_i32_0 = arith.constant 0 : i32
    %c0_i32_1 = arith.constant 0 : i32
    return %c0_i32, %c0_i32_0 : i32, i32
  }
  func.func @transform_5(%arg0: i32) -> (i32, i32) {
    %c0_i32 = arith.constant 0 : i32
    %c0_i32_0 = arith.constant 0 : i32
    return %arg0, %c0_i32 : i32, i32
  }
}

</mosaic_0001>

<bundles_post_ra>
// kernel: tpu_custom_call.1
= control target key start
LH: loop header
LB: loop body
LE: loop exit
PB: predicated region body
PF: predicated region fallthrough
CT: control target
= control target key end

     0   :  { %10 = vsyncpa [#allocation3], 0  ;;  %s3079_s0 = inlined_call_operand.hbm [shape: f32[8,20], index: 0, kind: input, shape index: {}]   ;;  %s3080_s1 = inlined_call_operand.hbm [shape: bf16[20,400], index: 1, kind: input, shape index: {}]   ;;  %s3081_s2 = inlined_call_operand.hbm [shape: f32[1,400], index: 2, kind: input, shape index: {}]   ;;  %s3082_s3 = inlined_call_operand.hbm [shape: bf16[400,896], index: 3, kind: input, shape index: {}]   ;;  %s3083_s4 = inlined_call_operand.hbm [shape: f32[1,896], index: 4, kind: input, shape index: {}]   ;;  %s3084_s5 = inlined_call_operand.hbm [shape: f32[8,896], index: 5, kind: output, shape index: {}]  }
   0x1   :  { %11 = vsyncpa [#allocation6], 0 }
   0x2   :  { %12 = vsyncpa [#allocation9], 0  ;;  %s29_s20 = sshll.u32 %s3080_s1, 4  ;;  %s30_s20 = int_to_ptr.hbm [resolvable:$true] %s29_s20 }
   0x3   :  { %13 = vsyncpa [#allocation4], 0  ;;  %s2965_s21 = smov [#allocation5]   ;;  %s53_s25 = sshll.u32 %s3082_s3, 4  ;;  %s54_s25 = int_to_ptr.hbm [resolvable:$true] %s53_s25 }
   0x4   :  { %s31_s22 = sshll.u32 %s2965_s21, 4  ;;  %s2966_s26 = smov 256   ;;  %s32_s22 = int_to_ptr.vmem [resolvable:$true] %s31_s22 }
   0x5   :  { %s2967_s27 = smov 16   ;;  %s2968_s28 = smov [#allocation8]  }
   0x6   :  { %37 = dma.hbm_to_vmem [thread:$0]  %s30_s20, 768, %s32_s22, [#allocation6], %s2966_s26, %s2966_s26, %s2967_s27  }
   0x7   :  { %s55_s29 = sshll.u32 %s2968_s28, 4  ;;  %s2969_s30 = smov 448   ;;  %s56_s29 = int_to_ptr.vmem [resolvable:$true] %s55_s29 }
   0x8   :  { %s2970_s6 = smov 28   ;;  %s19_s8 = sshll.u32 %s3079_s0, 4  ;;  %s20_s8 = int_to_ptr.hbm [resolvable:$true] %s19_s8 }
   0x9   :  { %61 = dma.hbm_to_vmem [thread:$0]  %s54_s25, 22400, %s56_s29, [#allocation9], %s2969_s30, %s2969_s30, %s2970_s6  }
   0xa   :  { %s2971_s9 = smov [#allocation2]   ;;  %s43_s12 = sshll.u32 %s3081_s2, 4  ;;  %s44_s12 = int_to_ptr.hbm [resolvable:$true] %s43_s12 }
   0xb   :  { %s21_s10 = sshll.u32 %s2971_s9, 4  ;;  %s2972_s13 = smov [#allocation7]   ;;  %s22_s10 = int_to_ptr.vmem [resolvable:$true] %s21_s10 }
   0xc   :  { %24 = dma.hbm_to_vmem [thread:$0]  %s20_s8, 128, %s22_s10, [#allocation3]  }
   0xd   :  { %s45_s14 = sshll.u32 %s2972_s13, 4  ;;  %s67_s17 = sshll.u32 %s3083_s4, 4  ;;  %s46_s14 = int_to_ptr.vmem [resolvable:$true] %s45_s14  ;;  %s68_s17 = int_to_ptr.hbm [resolvable:$true] %s67_s17 }
   0xe   :  { %48 = dma.hbm_to_vmem [thread:$0]  %s44_s12, 64, %s46_s14, [#allocation6]  }
   0xf   :  { %s2973_s0 = smov [#allocation10]  }
  0x10   :  { %s69_s18 = sshll.u32 %s2973_s0, 4  ;;  %s70_s18 = int_to_ptr.vmem [resolvable:$true] %s69_s18 }
  0x11   :  { %72 = dma.hbm_to_vmem [thread:$0]  %s68_s17, 112, %s70_s18, [#allocation9]  }
  0x12   :  { %2957 = dma.done.wait [#allocation3], 128  }
  0x13   :  { %2958 = vsyncadd [#allocation3], 4294967168 }
  0x14   :  { %2959 = dma.done.wait [#allocation6], 832  }
  0x15   :  { %2960 = vsyncadd [#allocation6], 4294966464 }
  0x16   :  { %2961 = dma.done.wait [#allocation9], 22512  }
  0x17   :  { %2962 = vsyncadd [#allocation9], 4294944784  ;;  %v100_v0 = vld [vmem:[#allocation5 + $0x20] sm:$0x33]  ;;  %vm146_vm0 = vcmask 1041408   ;;  %v94_v26 = vld [vmem:[#allocation2] sm:$0xff] }
  0x18   :  { %v101_v1 = vld [vmem:[#allocation5 + $0x28] sm:$0x33]  ;;  %v126_v2 = vunpack.c.l.b16 %v100_v0  ;;  %v127_v3 = vunpack.c.h.b16 %v100_v0  ;;  %v1864_v6 = vld [vmem:[#allocation5] sm:$0xf]  ;;  %v2598_v7 = vld [vmem:[#allocation5 + $0xc] sm:$0xf0]  ;;  %v95_v34 = vpack.c.bf16 %v94_v26, %v94_v26 }
  0x19   :  { %v128_v4 = vunpack.c.l.b16 %v101_v1  ;;  %v129_v5 = vunpack.c.h.b16 %v101_v1  ;;  %v2596_v8 = vld [vmem:[#allocation5 + $0x4] sm:$0xf]  ;;  %v1866_v13 = vld [vmem:[#allocation5 + $0x10] sm:$0xf0]  ;;  %v1872_v14 = vld [vmem:[#allocation5 + $0x8] sm:$0xf]  ;;  %v1865_v24 = vor.u32 %v2598_v7, %v1864_v6 }
  0x1a   :  { %v134_v9 = vpack.c.b16 %v126_v2, %v126_v2  ;;  %v135_v10 = vpack.c.b16 %v127_v3, %v127_v3  ;;  %v2599_v15 = vld [vmem:[#allocation5 + $0x14] sm:$0xf0]  ;;  %v2597_v16 = vld [vmem:[#allocation5 + $0xc] sm:$0xf]  ;;  %v1874_v17 = vld [vmem:[#allocation5 + $0x18] sm:$0xf0]  ;;  %v1869_v25 = vor.u32 %v2596_v8, %v1866_v13 }
  0x1b   :  { %v136_v11 = vpack.c.b16 %v128_v4, %v128_v4  ;;  %v137_v12 = vpack.c.b16 %v129_v5, %v129_v5  ;;  %v2080_v18 = vld [vmem:[#allocation8 + $0x188] sm:$0xf]  ;;  %v2652_v23 = vld [vmem:[#allocation8 + $0x1a0] sm:$0xf0]  ;;  %v1873_v27 = vor.u32 %v2599_v15, %v1872_v14  ;;  %v1877_v28 = vor.u32 %v2597_v16, %v1874_v17  ;;  %v2052_v32 = vld [vmem:[#allocation8 + $0x150] sm:$0xf] }
  0x1c   :  { %v148_v19 = vsel %vm146_vm0, %v134_v9, 0  ;;  %v151_v20 = vsel %vm146_vm0, %v135_v10, 0  ;;  %v2304_v29 = vld [vmem:[#allocation8 + $0x348] sm:$0xf]  ;;  %v2708_v30 = vld [vmem:[#allocation8 + $0x360] sm:$0xf0]  ;;  %v2081_v31 = vor.u32 %v2652_v23, %v2080_v18 }
  0x1d   :  { %v154_v21 = vsel %vm146_vm0, %v136_v11, 0  ;;  %v157_v22 = vsel %vm146_vm0, %v137_v12, 0  ;;  %165 = vmatpush.bf16.msra.mxu0 %v148_v19  ;;  %178 = vmatpush.bf16.msra.mxu1 %v151_v20  ;;  %v2305_v33 = vor.u32 %v2708_v30, %v2304_v29  ;;  %v2645_v35 = vld [vmem:[#allocation8 + $0x168] sm:$0xf0]  ;;  %v2276_v36 = vld [vmem:[#allocation8 + $0x310] sm:$0xf] }
  0x1e   :  { %191 = vmatpush.bf16.msra.mxu2 %v154_v21  ;;  %204 = vmatpush.bf16.msra.mxu3 %v157_v22  ;;  %v2701_v37 = vld [vmem:[#allocation8 + $0x328] sm:$0xf0]  ;;  %vm142_vm1 = vcmask 162816   ;;  %v2053_v38 = vor.u32 %v2645_v35, %v2052_v32  ;;  %v2024_v39 = vld [vmem:[#allocation8 + $0x118] sm:$0xf]  ;;  %vm1335_vm2 = vcmask 130048  }
  0x1f   :  { %v2638_v40 = vld [vmem:[#allocation8 + $0x130] sm:$0xf0]  ;;  %v2277_v41 = vor.u32 %v2701_v37, %v2276_v36  ;;  %v2248_v42 = vld [vmem:[#allocation8 + $0x2d8] sm:$0xf]  ;;  %v2528_v44 = vld [vmem:[#allocation8 + $0x508] sm:$0xf] }
  0x20   :  { %v2694_v43 = vld [vmem:[#allocation8 + $0x2f0] sm:$0xf0]  ;;  %v2764_v45 = vld [vmem:[#allocation8 + $0x520] sm:$0xf0]  ;;  %v1996_v46 = vld [vmem:[#allocation8 + $0xe0] sm:$0xf]  ;;  %v2025_v51 = vor.u32 %v2638_v40, %v2024_v39 }
  0x21   :  { %166 = vmatpush.bf16.msra.mxu0 %v1865_v24  ;;  %179 = vmatpush.bf16.msra.mxu1 %v1869_v25  ;;  %v2631_v47 = vld [vmem:[#allocation8 + $0xf8] sm:$0xf0]  ;;  %v2220_v48 = vld [vmem:[#allocation8 + $0x2a0] sm:$0xf]  ;;  %v2529_v49 = vor.u32 %v2764_v45, %v2528_v44  ;;  %v2249_v52 = vor.u32 %v2694_v43, %v2248_v42  ;;  %v2649_v54 = vld [vmem:[#allocation8 + $0x18c] sm:$0xf] }
  0x22   :  { %192 = vmatpush.bf16.msra.mxu2 %v1873_v27  ;;  %205 = vmatpush.bf16.msra.mxu3 %v1877_v28  ;;  %v2556_v50 = vld [vmem:[#allocation8 + $0x540] sm:$0xf]  ;;  %v2771_v53 = vld [vmem:[#allocation8 + $0x558] sm:$0xf0]  ;;  %v2082_v55 = vld [vmem:[#allocation8 + $0x1a4] sm:$0xf0]  ;;  %v1997_v1 = vor.u32 %v2631_v47, %v1996_v46 }
  0x23   :  { %v2687_v56 = vld [vmem:[#allocation8 + $0x2b8] sm:$0xf0]  ;;  %v2557_v57 = vor.u32 %v2771_v53, %v2556_v50  ;;  %v2085_v58 = vor.u32 %v2649_v54, %v2082_v55  ;;  %v2500_v59 = vld [vmem:[#allocation8 + $0x4d0] sm:$0xf]  ;;  %v2757_v60 = vld [vmem:[#allocation8 + $0x4e8] sm:$0xf0] }
  0x24   :  { %1878 = vmatmul.msk.bf16.vlgmr.msra.gmra.mxu0 %vm142_vm1, %v95_v34  ;;  %1879 = vmatmul.msk.bf16.vlgmr.msra.gmra.mxu1 %vm142_vm1, %v95_v34  ;;  %v2501_v61 = vor.u32 %v2757_v60, %v2500_v59  ;;  %v2642_v62 = vld [vmem:[#allocation8 + $0x154] sm:$0xf]  ;;  %v2054_v63 = vld [vmem:[#allocation8 + $0x16c] sm:$0xf0]  ;;  %v2472_v0 = vld [vmem:[#allocation8 + $0x498] sm:$0xf]  ;;  %v2221_v3 = vor.u32 %v2687_v56, %v2220_v48 }
  0x25   :  { %1339 = vmatpush.bf16.msrb.mxu0 %v2081_v31  ;;  %1352 = vmatpush.bf16.msrb.mxu1 %v2305_v33  ;;  %v1968_v2 = vld [vmem:[#allocation8 + $0xa8] sm:$0xf]  ;;  %v2750_v4 = vld [vmem:[#allocation8 + $0x4b0] sm:$0xf0]  ;;  %v2624_v5 = vld [vmem:[#allocation8 + $0xc0] sm:$0xf0]  ;;  %v2057_v8 = vor.u32 %v2642_v62, %v2054_v63 }
  0x26   :  { %1880 = vmatmul.msk.bf16.vlgmr.msra.gmra.mxu2 %vm142_vm1, %v95_v34  ;;  %1881 = vmatmul.msk.bf16.vlgmr.msra.gmra.mxu3 %vm142_vm1, %v95_v34  ;;  %v2192_v6 = vld [vmem:[#allocation8 + $0x268] sm:$0xf]  ;;  %v2680_v7 = vld [vmem:[#allocation8 + $0x280] sm:$0xf0]  ;;  %v2473_v9 = vor.u32 %v2750_v4, %v2472_v0  ;;  %v2635_v10 = vld [vmem:[#allocation8 + $0x11c] sm:$0xf]  ;;  %v1969_v14 = vor.u32 %v2624_v5, %v1968_v2 }
  0x27   :  { %1365 = vmatpush.bf16.msrb.mxu2 %v2529_v49  ;;  %1385 = vmatpush.bf16.msrb.mxu3 %v2557_v57  ;;  %v2026_v11 = vld [vmem:[#allocation8 + $0x134] sm:$0xf0]  ;;  %v2444_v12 = vld [vmem:[#allocation8 + $0x460] sm:$0xf]  ;;  %v2743_v13 = vld [vmem:[#allocation8 + $0x478] sm:$0xf0]  ;;  %v2193_v17 = vor.u32 %v2680_v7, %v2192_v6 }
  0x28   :  { %v1940_v15 = vld [vmem:[#allocation8 + $0x70] sm:$0xf]  ;;  %v2617_v16 = vld [vmem:[#allocation8 + $0x88] sm:$0xf0]  ;;  %v2029_v20 = vor.u32 %v2635_v10, %v2026_v11  ;;  %v2445_v21 = vor.u32 %v2743_v13, %v2444_v12  ;;  %v2628_v22 = vld [vmem:[#allocation8 + $0xe4] sm:$0xf] }
  0x29   :  { %1340 = vmatpush.bf16.msrb.mxu0 %v2053_v38  ;;  %1353 = vmatpush.bf16.msrb.mxu1 %v2277_v41  ;;  %v2164_v18 = vld [vmem:[#allocation8 + $0x230] sm:$0xf]  ;;  %v2673_v19 = vld [vmem:[#allocation8 + $0x248] sm:$0xf0]  ;;  %v1998_v23 = vld [vmem:[#allocation8 + $0xfc] sm:$0xf0]  ;;  %v1941_v26 = vor.u32 %v2617_v16, %v1940_v15 }
  0x2a   :  { %v2416_v24 = vld [vmem:[#allocation8 + $0x428] sm:$0xf]  ;;  %v2736_v25 = vld [vmem:[#allocation8 + $0x440] sm:$0xf0]  ;;  %v1912_v27 = vld [vmem:[#allocation8 + $0x38] sm:$0xf]  ;;  %v2165_v28 = vor.u32 %v2673_v19, %v2164_v18  ;;  %v2001_v32 = vor.u32 %v2628_v22, %v1998_v23 }
  0x2b   :  { %1391 = vmatpush.bf16.msra.mxu3 %v2085_v58  ;;  %1366 = vmatpush.bf16.msrb.mxu2 %v2501_v61  ;;  %v2610_v29 = vld [vmem:[#allocation8 + $0x50] sm:$0xf0]  ;;  %v2136_v30 = vld [vmem:[#allocation8 + $0x1f8] sm:$0xf]  ;;  %v2417_v33 = vor.u32 %v2736_v25, %v2416_v24  ;;  %v1884_v35 = vld [vmem:[#allocation8] sm:$0xf] }
  0x2c   :  { %v2666_v31 = vld [vmem:[#allocation8 + $0x210] sm:$0xf0]  ;;  %v1913_v34 = vor.u32 %v2610_v29, %v1912_v27  ;;  %v2603_v36 = vld [vmem:[#allocation8 + $0x18] sm:$0xf0]  ;;  %v2705_v38 = vld [vmem:[#allocation8 + $0x34c] sm:$0xf] }
  0x2d   :  { %1341 = vmatpush.bf16.msrb.mxu0 %v2025_v51  ;;  %1354 = vmatpush.bf16.msrb.mxu1 %v2249_v52  ;;  %v2137_v37 = vor.u32 %v2666_v31, %v2136_v30  ;;  %v2108_v39 = vld [vmem:[#allocation8 + $0x1c0] sm:$0xf]  ;;  %v2659_v40 = vld [vmem:[#allocation8 + $0x1d8] sm:$0xf0]  ;;  %v2306_v41 = vld [vmem:[#allocation8 + $0x364] sm:$0xf0]  ;;  %v1885_v44 = vor.u32 %v2603_v36, %v1884_v35 }
  0x2e   :  { %v2761_v42 = vld [vmem:[#allocation8 + $0x50c] sm:$0xf]  ;;  %v2530_v43 = vld [vmem:[#allocation8 + $0x524] sm:$0xf0]  ;;  %v2109_v45 = vor.u32 %v2659_v40, %v2108_v39  ;;  %v2309_v46 = vor.u32 %v2705_v38, %v2306_v41  ;;  %v2698_v47 = vld [vmem:[#allocation8 + $0x314] sm:$0xf] }
  0x2f   :  { %1392 = vmatpush.bf16.msra.mxu3 %v2057_v8  ;;  %1367 = vmatpush.bf16.msrb.mxu2 %v2473_v9  ;;  %v2533_v48 = vor.u32 %v2761_v42, %v2530_v43  ;;  %v2278_v49 = vld [vmem:[#allocation8 + $0x32c] sm:$0xf0]  ;;  %v2754_v50 = vld [vmem:[#allocation8 + $0x4d4] sm:$0xf]  ;;  %v2691_v53 = vld [vmem:[#allocation8 + $0x2dc] sm:$0xf] }
  0x30   :  { %v2502_v51 = vld [vmem:[#allocation8 + $0x4ec] sm:$0xf0]  ;;  %v2281_v52 = vor.u32 %v2698_v47, %v2278_v49  ;;  %v2250_v55 = vld [vmem:[#allocation8 + $0x2f4] sm:$0xf0]  ;;  %v2747_v56 = vld [vmem:[#allocation8 + $0x49c] sm:$0xf] }
  0x31   :  { %1342 = vmatpush.bf16.msrb.mxu0 %v1997_v1  ;;  %1355 = vmatpush.bf16.msrb.mxu1 %v2221_v3  ;;  %v2505_v54 = vor.u32 %v2754_v50, %v2502_v51  ;;  %v2474_v57 = vld [vmem:[#allocation8 + $0x4b4] sm:$0xf0]  ;;  %v2253_v58 = vor.u32 %v2691_v53, %v2250_v55  ;;  %v2684_v60 = vld [vmem:[#allocation8 + $0x2a4] sm:$0xf]  ;;  %v2222_v61 = vld [vmem:[#allocation8 + $0x2bc] sm:$0xf0] }
  0x32   :  { %v2477_v59 = vor.u32 %v2747_v56, %v2474_v57  ;;  %v2225_v62 = vor.u32 %v2684_v60, %v2222_v61  ;;  %v2677_v63 = vld [vmem:[#allocation8 + $0x26c] sm:$0xf]  ;;  %v2194_v0 = vld [vmem:[#allocation8 + $0x284] sm:$0xf0]  ;;  %v2670_v2 = vld [vmem:[#allocation8 + $0x234] sm:$0xf] }
  0x33   :  { %1393 = vmatpush.bf16.msra.mxu3 %v2029_v20  ;;  %1368 = vmatpush.bf16.msrb.mxu2 %v2445_v21  ;;  %v2197_v1 = vor.u32 %v2677_v63, %v2194_v0  ;;  %v2166_v3 = vld [vmem:[#allocation8 + $0x24c] sm:$0xf0]  ;;  %v2621_v5 = vld [vmem:[#allocation8 + $0xac] sm:$0xf]  ;;  %v1970_v6 = vld [vmem:[#allocation8 + $0xc4] sm:$0xf0] }
  0x34   :  { %v2169_v4 = vor.u32 %v2670_v2, %v2166_v3  ;;  %v1973_v7 = vor.u32 %v2621_v5, %v1970_v6  ;;  %v2388_v8 = vld [vmem:[#allocation8 + $0x3f0] sm:$0xf]  ;;  %v2729_v9 = vld [vmem:[#allocation8 + $0x408] sm:$0xf0]  ;;  %v2663_v11 = vld [vmem:[#allocation8 + $0x1fc] sm:$0xf] }
  0x35   :  { %1343 = vmatpush.bf16.msrb.mxu0 %v1969_v14  ;;  %1356 = vmatpush.bf16.msrb.mxu1 %v2193_v17  ;;  %v2389_v10 = vor.u32 %v2729_v9, %v2388_v8  ;;  %v2138_v12 = vld [vmem:[#allocation8 + $0x214] sm:$0xf0]  ;;  %v2740_v14 = vld [vmem:[#allocation8 + $0x464] sm:$0xf]  ;;  %v2446_v15 = vld [vmem:[#allocation8 + $0x47c] sm:$0xf0] }
  0x36   :  { %v2141_v13 = vor.u32 %v2663_v11, %v2138_v12  ;;  %v2449_v16 = vor.u32 %v2740_v14, %v2446_v15  ;;  %v2614_v17 = vld [vmem:[#allocation8 + $0x74] sm:$0xf]  ;;  %v1942_v18 = vld [vmem:[#allocation8 + $0x8c] sm:$0xf0]  ;;  %v2360_v20 = vld [vmem:[#allocation8 + $0x3b8] sm:$0xf] }
  0x37   :  { %1394 = vmatpush.bf16.msra.mxu3 %v2001_v32  ;;  %1369 = vmatpush.bf16.msrb.mxu2 %v2417_v33  ;;  %v1945_v19 = vor.u32 %v2614_v17, %v1942_v18  ;;  %v2722_v21 = vld [vmem:[#allocation8 + $0x3d0] sm:$0xf0]  ;;  %v2656_v23 = vld [vmem:[#allocation8 + $0x1c4] sm:$0xf]  ;;  %v2110_v24 = vld [vmem:[#allocation8 + $0x1dc] sm:$0xf0] }
  0x38   :  { %v2361_v22 = vor.u32 %v2722_v21, %v2360_v20  ;;  %v2113_v25 = vor.u32 %v2656_v23, %v2110_v24  ;;  %v2418_v27 = vld [vmem:[#allocation8 + $0x444] sm:$0xf0]  ;;  %v2607_v29 = vld [vmem:[#allocation8 + $0x3c] sm:$0xf]  ;;  %v1914_v30 = vld [vmem:[#allocation8 + $0x54] sm:$0xf0] }
  0x39   :  { %1344 = vmatpush.bf16.msrb.mxu0 %v1941_v26  ;;  %1357 = vmatpush.bf16.msrb.mxu1 %v2165_v28  ;;  %v2733_v26 = vld [vmem:[#allocation8 + $0x42c] sm:$0xf]  ;;  %v2332_v31 = vld [vmem:[#allocation8 + $0x380] sm:$0xf]  ;;  %v1917_v32 = vor.u32 %v2607_v29, %v1914_v30  ;;  %v2715_v33 = vld [vmem:[#allocation8 + $0x398] sm:$0xf0] }
  0x3a   :  { %v2421_v28 = vor.u32 %v2733_v26, %v2418_v27  ;;  %v2726_v35 = vld [vmem:[#allocation8 + $0x3f4] sm:$0xf]  ;;  %v2390_v36 = vld [vmem:[#allocation8 + $0x40c] sm:$0xf0]  ;;  %v2600_v38 = vld [vmem:[#allocation8 + $0x4] sm:$0xf] }
  0x3b   :  { %1395 = vmatpush.bf16.msra.mxu3 %v1973_v7  ;;  %1370 = vmatpush.bf16.msrb.mxu2 %v2389_v10  ;;  %v1886_v39 = vld [vmem:[#allocation8 + $0x1c] sm:$0xf0]  ;;  %v2768_v41 = vld [vmem:[#allocation8 + $0x544] sm:$0xf]  ;;  %v102_v50 = vld [vmem:[#allocation7] sm:$0xf] }
  0x3c   :  { %v1889_v40 = vor.u32 %v2600_v38, %v1886_v39  ;;  %v2558_v42 = vld [vmem:[#allocation8 + $0x55c] sm:$0xf0]  ;;  %v2712_v47 = vld [vmem:[#allocation8 + $0x384] sm:$0xf]  ;;  %v104_v51 = vperm.slane %v102_v50, 0  ;;  %v106_v63 = vperm.slane %v102_v50, 2 }
  0x3d   :  { %1345 = vmatpush.bf16.msrb.mxu0 %v1913_v34  ;;  %1358 = vmatpush.bf16.msrb.mxu1 %v2137_v37  ;;  %v2333_v34 = vor.u32 %v2715_v33, %v2332_v31  ;;  %v2393_v37 = vor.u32 %v2726_v35, %v2390_v36  ;;  %v2561_v43 = vor.u32 %v2768_v41, %v2558_v42  ;;  %v2536_v55 = vld [vmem:[#allocation8 + $0x510] sm:$0xf]  ;;  %v2772_v60 = vld [vmem:[#allocation8 + $0x560] sm:$0xf0]  ;;  %v107_v0 = vperm.slane %v102_v50, 3  ;;  %s2974_s2 = smov [#allocation11]  }
  0x3e   :  { %v2508_v5 = vld [vmem:[#allocation8 + $0x4d8] sm:$0xf]  ;;  %v2758_v6 = vld [vmem:[#allocation8 + $0x4f0] sm:$0xf0]  ;;  %v2088_v9 = vld [vmem:[#allocation8 + $0x190] sm:$0xf] }
  0x3f   :  { %1396 = vmatpush.bf16.msra.mxu3 %v1945_v19  ;;  %1371 = vmatpush.bf16.msrb.mxu2 %v2361_v22  ;;  %v2509_v12 = vor.u32 %v2758_v6, %v2508_v5  ;;  %v2312_v14 = vld [vmem:[#allocation8 + $0x350] sm:$0xf]  ;;  %v2709_v15 = vld [vmem:[#allocation8 + $0x368] sm:$0xf0]  ;;  %v2480_v18 = vld [vmem:[#allocation8 + $0x4a0] sm:$0xf] }
  0x40   :  { %v2751_v19 = vld [vmem:[#allocation8 + $0x4b8] sm:$0xf0]  ;;  %v2313_v23 = vor.u32 %v2709_v15, %v2312_v14  ;;  %v2060_v24 = vld [vmem:[#allocation8 + $0x158] sm:$0xf]  ;;  %v2702_v30 = vld [vmem:[#allocation8 + $0x330] sm:$0xf0] }
  0x41   :  { %1346 = vmatpush.bf16.msrb.mxu0 %v1885_v44  ;;  %1359 = vmatpush.bf16.msrb.mxu1 %v2109_v45  ;;  %v2719_v44 = vld [vmem:[#allocation8 + $0x3bc] sm:$0xf]  ;;  %v2362_v45 = vld [vmem:[#allocation8 + $0x3d4] sm:$0xf0]  ;;  %v2481_v27 = vor.u32 %v2751_v19, %v2480_v18  ;;  %v2452_v31 = vld [vmem:[#allocation8 + $0x468] sm:$0xf] }
  0x42   :  { %v2284_v29 = vld [vmem:[#allocation8 + $0x318] sm:$0xf]  ;;  %v2639_v39 = vld [vmem:[#allocation8 + $0x138] sm:$0xf0]  ;;  %v2424_v42 = vld [vmem:[#allocation8 + $0x430] sm:$0xf] }
  0x43   :  { %1397 = vmatpush.bf16.msra.mxu3 %v1917_v32  ;;  %1372 = vmatpush.bf16.msrb.mxu2 %v2333_v34  ;;  %v2744_v32 = vld [vmem:[#allocation8 + $0x480] sm:$0xf0]  ;;  %v2285_v36 = vor.u32 %v2702_v30, %v2284_v29  ;;  %v2695_v41 = vld [vmem:[#allocation8 + $0x2f8] sm:$0xf0]  ;;  %v2629_v18 = vld [vmem:[#allocation8 + $0xec] sm:$0xf] }
  0x44   :  { %v2453_v38 = vor.u32 %v2744_v32, %v2452_v31  ;;  %v2723_v5 = vld [vmem:[#allocation8 + $0x3d8] sm:$0xf0]  ;;  %v2636_v6 = vld [vmem:[#allocation8 + $0x124] sm:$0xf]  ;;  %v2006_v19 = vld [vmem:[#allocation8 + $0x104] sm:$0xf0] }
  0x45   :  { %1404 = vmatpush.bf16.msra.mxu0 %v2309_v46  ;;  %1417 = vmatpush.bf16.msra.mxu1 %v2533_v48  ;;  %v2365_v46 = vor.u32 %v2719_v44, %v2362_v45  ;;  %v2334_v48 = vld [vmem:[#allocation8 + $0x39c] sm:$0xf0]  ;;  %v2650_v44 = vld [vmem:[#allocation8 + $0x194] sm:$0xf]  ;;  %v2090_v45 = vld [vmem:[#allocation8 + $0x1ac] sm:$0xf0]  ;;  %v2009_v31 = vor.u32 %v2629_v18, %v2006_v19 }
  0x46   :  { %v2337_v49 = vor.u32 %v2712_v47, %v2334_v48  ;;  %v2004_v48 = vld [vmem:[#allocation8 + $0xe8] sm:$0xf]  ;;  %v2667_v29 = vld [vmem:[#allocation8 + $0x218] sm:$0xf0]  ;;  %v2622_v32 = vld [vmem:[#allocation8 + $0xb4] sm:$0xf] }
  0x47   :  { %1398 = vmatpush.bf16.msra.mxu3 %v1889_v40  ;;  %1437 = vmatpush.bf16.msra.mxu2 %v2561_v43  ;;  %v2256_v40 = vld [vmem:[#allocation8 + $0x2e0] sm:$0xf]  ;;  %v2737_v43 = vld [vmem:[#allocation8 + $0x448] sm:$0xf0]  ;;  %v2710_v18 = vld [vmem:[#allocation8 + $0x370] sm:$0xf0] }
  0x48   :  { %v2257_v47 = vor.u32 %v2695_v41, %v2256_v40  ;;  %v2604_v40 = vld [vmem:[#allocation8 + $0x20] sm:$0xf0]  ;;  %v2116_v41 = vld [vmem:[#allocation8 + $0x1c8] sm:$0xf]  ;;  %s1848_s4 = sshll.u32 %s2974_s2, 4  ;;  %s1850_s21 = sshll.u32 %s3084_s5, 4  ;;  %s1849_s4 = int_to_ptr.vmem [resolvable:$true] %s1848_s4  ;;  %s1851_s21 = int_to_ptr.hbm [resolvable:$true] %s1850_s21 }
  0x49   :  { %1405 = vmatpush.bf16.msra.mxu0 %v2281_v52  ;;  %1418 = vmatpush.bf16.msra.mxu1 %v2505_v54  ;;  %v105_v52 = vperm.slane %v102_v50, 1  ;;  %v2228_v50 = vld [vmem:[#allocation8 + $0x2a8] sm:$0xf] }
  0x4d   :  { %1406 = vmatpush.bf16.msra.mxu0 %v2253_v58  ;;  %1419 = vmatpush.bf16.msra.mxu1 %v2477_v59  ;;  %v2765_v58 = vld [vmem:[#allocation8 + $0x528] sm:$0xf0]  ;;  %v2564_v59 = vld [vmem:[#allocation8 + $0x548] sm:$0xf] }
  0x4e   :  { %v2565_v2 = vor.u32 %v2772_v60, %v2564_v59  ;;  %v1976_v60 = vld [vmem:[#allocation8 + $0xb0] sm:$0xf] }
  0x51   :  { %1407 = vmatpush.bf16.msra.mxu0 %v2225_v62  ;;  %1420 = vmatpush.bf16.msra.mxu1 %v2449_v16 }
  0x55   :  { %1408 = vmatpush.bf16.msra.mxu0 %v2197_v1  ;;  %1421 = vmatpush.bf16.msra.mxu1 %v2421_v28  ;;  %v2537_v1 = vor.u32 %v2765_v58, %v2536_v55  ;;  %v2646_v28 = vld [vmem:[#allocation8 + $0x170] sm:$0xf0] }
  0x56   :  { %v2061_v35 = vor.u32 %v2646_v28, %v2060_v24  ;;  %v2730_v55 = vld [vmem:[#allocation8 + $0x410] sm:$0xf0]  ;;  %v2566_v24 = vld [vmem:[#allocation8 + $0x564] sm:$0xf0]  ;;  %v2144_v28 = vld [vmem:[#allocation8 + $0x200] sm:$0xf] }
  0x59   :  { %1409 = vmatpush.bf16.msra.mxu0 %v2169_v4  ;;  %1422 = vmatpush.bf16.msra.mxu1 %v2393_v37  ;;  %v2032_v37 = vld [vmem:[#allocation8 + $0x120] sm:$0xf] }
  0x5d   :  { %1410 = vmatpush.bf16.msra.mxu0 %v2141_v13  ;;  %1423 = vmatpush.bf16.msra.mxu1 %v2365_v46  ;;  %v2653_v13 = vld [vmem:[#allocation8 + $0x1a8] sm:$0xf0]  ;;  %v2033_v46 = vor.u32 %v2639_v39, %v2032_v37  ;;  %v1892_v39 = vld [vmem:[#allocation8 + $0x8] sm:$0xf] }
  0x5e   :  { %v2089_v22 = vor.u32 %v2653_v13, %v2088_v9  ;;  %v2674_v13 = vld [vmem:[#allocation8 + $0x250] sm:$0xf0] }
  0x61   :  { %1411 = vmatpush.bf16.msra.mxu0 %v2113_v25  ;;  %1424 = vmatpush.bf16.msra.mxu1 %v2337_v49  ;;  %v2632_v49 = vld [vmem:[#allocation8 + $0x100] sm:$0xf0] }
  0x62   :  { %v2005_v58 = vor.u32 %v2632_v49, %v2004_v48  ;;  %v2538_v48 = vld [vmem:[#allocation8 + $0x52c] sm:$0xf0]  ;;  %v2615_v49 = vld [vmem:[#allocation8 + $0x7c] sm:$0xf] }
  0xa1   :  { %v168_v53 = vpop.f32.mrf.mxu0  ;;  %v181_v54 = vpop.f32.mrf.mxu1 }
  0xa2   :  { %v169_v56 = vadd.f32 %v168_v53, %v104_v51  ;;  %v182_v57 = vadd.f32 %v181_v54, %v105_v52  ;;  %v2688_v51 = vld [vmem:[#allocation8 + $0x2c0] sm:$0xf0]  ;;  %v2425_v52 = vor.u32 %v2737_v43, %v2424_v42  ;;  %v2093_v53 = vor.u32 %v2650_v44, %v2090_v45  ;;  %v2396_v54 = vld [vmem:[#allocation8 + $0x3f8] sm:$0xf]  ;;  %v2706_v43 = vld [vmem:[#allocation8 + $0x354] sm:$0xf] }
  0xa3   :  { %v2229_v59 = vor.u32 %v2688_v51, %v2228_v50  ;;  %v2660_v42 = vld [vmem:[#allocation8 + $0x1e0] sm:$0xf0]  ;;  %v2314_v44 = vld [vmem:[#allocation8 + $0x36c] sm:$0xf0]  ;;  %v1950_v50 = vld [vmem:[#allocation8 + $0x94] sm:$0xf0] }
  0xa4   :  { %v211_v61 = vmax.f32 %v169_v56, 0.0  ;;  %v212_v62 = vmax.f32 %v182_v57, 0.0  ;;  %v2643_v56 = vld [vmem:[#allocation8 + $0x15c] sm:$0xf]  ;;  %v2062_v57 = vld [vmem:[#allocation8 + $0x174] sm:$0xf0] }
  0xa5   :  { %v2068_v51 = vld [vmem:[#allocation8 + $0x160] sm:$0xf] }
  0xa6   :  { %v3024_v3 = vpack.c.bf16 %v211_v61, %v211_v61  ;;  %v3026_v4 = vpack.c.bf16 %v212_v62, %v212_v62  ;;  %v2625_v61 = vld [vmem:[#allocation8 + $0xc8] sm:$0xf0]  ;;  %v2200_v62 = vld [vmem:[#allocation8 + $0x270] sm:$0xf] }
  0xa8   :  { %1347 = vmatmul.bf16.vlgmr.msrb.gmra.mxu0 %v3024_v3  ;;  %1360 = vmatmul.bf16.vlgmr.msrb.gmra.mxu1 %v3026_v4 }
  0xa9   :  { %v194_v7 = vpop.f32.mrf.mxu2  ;;  %v207_v8 = vpop.f32.mrf.mxu3  ;;  %1469 = vmatpush.bf16.msrb.mxu0 %v2537_v1  ;;  %1489 = vmatpush.bf16.msrb.mxu1 %v2565_v2  ;;  %v2065_v1 = vor.u32 %v2643_v56, %v2062_v57  ;;  %v2368_v2 = vld [vmem:[#allocation8 + $0x3c0] sm:$0xf]  ;;  %v2699_v57 = vld [vmem:[#allocation8 + $0x31c] sm:$0xf] }
  0xaa   :  { %v195_v10 = vadd.f32 %v194_v7, %v106_v63  ;;  %v208_v11 = vadd.f32 %v207_v8, %v107_v0  ;;  %v170_v16 = vpop.f32.mrf.mxu0  ;;  %v183_v17 = vpop.f32.mrf.mxu1  ;;  %v2681_v63 = vld [vmem:[#allocation8 + $0x288] sm:$0xf0]  ;;  %v2397_v0 = vor.u32 %v2730_v55, %v2396_v54  ;;  %v2034_v7 = vld [vmem:[#allocation8 + $0x13c] sm:$0xf0]  ;;  %v1977_v8 = vor.u32 %v2625_v61, %v1976_v60  ;;  %v2755_v61 = vld [vmem:[#allocation8 + $0x4dc] sm:$0xf] }
  0xab   :  { %v2201_v9 = vor.u32 %v2681_v63, %v2200_v62  ;;  %v2369_v14 = vor.u32 %v2723_v5, %v2368_v2  ;;  %v2037_v15 = vor.u32 %v2636_v6, %v2034_v7  ;;  %v2340_v16 = vld [vmem:[#allocation8 + $0x388] sm:$0xf]  ;;  %v2716_v17 = vld [vmem:[#allocation8 + $0x3a0] sm:$0xf0]  ;;  %v2117_v54 = vor.u32 %v2660_v42, %v2116_v41  ;;  %v2510_v62 = vld [vmem:[#allocation8 + $0x4f4] sm:$0xf0] }
  0xac   :  { %v213_v20 = vmax.f32 %v195_v10, 0.0  ;;  %v214_v21 = vmax.f32 %v208_v11, 0.0  ;;  %v1948_v10 = vld [vmem:[#allocation8 + $0x78] sm:$0xf]  ;;  %v2618_v11 = vld [vmem:[#allocation8 + $0x90] sm:$0xf0]  ;;  %v2341_v30 = vor.u32 %v2716_v17, %v2340_v16  ;;  %v2317_v55 = vor.u32 %v2706_v43, %v2314_v44 }
  0xad   :  { %1470 = vmatpush.bf16.msrb.mxu0 %v2509_v12  ;;  %v2172_v12 = vld [vmem:[#allocation8 + $0x238] sm:$0xf]  ;;  %v2608_v63 = vld [vmem:[#allocation8 + $0x44] sm:$0xf]  ;;  %v2513_v6 = vor.u32 %v2755_v61, %v2510_v62  ;;  %v2633_v16 = vld [vmem:[#allocation8 + $0x108] sm:$0xf0] }
  0xae   :  { %v3030_v25 = vpack.c.bf16 %v213_v20, %v213_v20  ;;  %v3032_v26 = vpack.c.bf16 %v214_v21, %v214_v21  ;;  %v1949_v20 = vor.u32 %v2618_v11, %v1948_v10  ;;  %v2173_v21 = vor.u32 %v2674_v13, %v2172_v12  ;;  %v2640_v2 = vld [vmem:[#allocation8 + $0x140] sm:$0xf0]  ;;  %v2482_v12 = vld [vmem:[#allocation8 + $0x4bc] sm:$0xf0]  ;;  %v2601_v13 = vld [vmem:[#allocation8 + $0xc] sm:$0xf] }
  0xaf   :  { %v2692_v7 = vld [vmem:[#allocation8 + $0x2e4] sm:$0xf]  ;;  %v2320_v17 = vld [vmem:[#allocation8 + $0x358] sm:$0xf]  ;;  %v1956_v42 = vld [vmem:[#allocation8 + $0x80] sm:$0xf] }
  0xb0   :  { %1373 = vmatmul.bf16.vlgmr.msrb.gmra.mxu2 %v3030_v25  ;;  %2582 = vmatmul.msk.bf16.vlgmr.msrb.gmra.mxu3 %vm1335_vm2, %v3032_v26  ;;  %v2748_v11 = vld [vmem:[#allocation8 + $0x4a4] sm:$0xf]  ;;  %v2619_v43 = vld [vmem:[#allocation8 + $0x98] sm:$0xf0]  ;;  %v2264_v44 = vld [vmem:[#allocation8 + $0x2e8] sm:$0xf] }
  0xb1   :  { %1443 = vmatpush.bf16.msrb.mxu2 %v2089_v22  ;;  %1456 = vmatpush.bf16.msrb.mxu3 %v2313_v23  ;;  %v196_v33 = vpop.f32.mrf.mxu2  ;;  %v209_v34 = vpop.f32.mrf.mxu3  ;;  %v1920_v22 = vld [vmem:[#allocation8 + $0x40] sm:$0xf]  ;;  %v2769_v23 = vld [vmem:[#allocation8 + $0x54c] sm:$0xf]  ;;  %v2720_v62 = vld [vmem:[#allocation8 + $0x3c4] sm:$0xf] }
  0xb2   :  { %1471 = vmatpush.bf16.msrb.mxu0 %v2481_v27  ;;  %v2611_v27 = vld [vmem:[#allocation8 + $0x58] sm:$0xf0]  ;;  %v2569_v33 = vor.u32 %v2769_v23, %v2566_v24  ;;  %v1978_v34 = vld [vmem:[#allocation8 + $0xcc] sm:$0xf0]  ;;  %v2230_v24 = vld [vmem:[#allocation8 + $0x2c4] sm:$0xf0] }
  0xb3   :  { %v1921_v37 = vor.u32 %v2611_v27, %v1920_v22  ;;  %v1981_v45 = vor.u32 %v2622_v32, %v1978_v34  ;;  %v2741_v27 = vld [vmem:[#allocation8 + $0x46c] sm:$0xf]  ;;  %v2292_v32 = vld [vmem:[#allocation8 + $0x320] sm:$0xf] }
  0xb4   :  { %v2146_v61 = vld [vmem:[#allocation8 + $0x21c] sm:$0xf0] }
  0xb5   :  { %1444 = vmatpush.bf16.msrb.mxu2 %v2061_v35  ;;  %1457 = vmatpush.bf16.msrb.mxu3 %v2285_v36  ;;  %v2096_v35 = vld [vmem:[#allocation8 + $0x198] sm:$0xf]  ;;  %v2654_v36 = vld [vmem:[#allocation8 + $0x1b0] sm:$0xf0] }
  0xb6   :  { %1472 = vmatpush.bf16.msrb.mxu0 %v2453_v38  ;;  %v2145_v38 = vor.u32 %v2667_v29, %v2144_v28  ;;  %v2454_v28 = vld [vmem:[#allocation8 + $0x484] sm:$0xf0]  ;;  %v2321_v29 = vor.u32 %v2710_v18, %v2320_v17  ;;  %v2544_v18 = vld [vmem:[#allocation8 + $0x518] sm:$0xf] }
  0xb8   :  { %1412 = vmatmul.bf16.vlgmr.msra.gmra.mxu0 %v3026_v4  ;;  %1425 = vmatmul.bf16.vlgmr.msra.gmra.mxu1 %v3030_v25 }
  0xb9   :  { %1445 = vmatpush.bf16.msrb.mxu2 %v2033_v46  ;;  %1458 = vmatpush.bf16.msrb.mxu3 %v2257_v47  ;;  %v2097_v46 = vor.u32 %v2654_v36, %v2096_v35  ;;  %v2762_v47 = vld [vmem:[#allocation8 + $0x514] sm:$0xf]  ;;  %v2457_v35 = vor.u32 %v2741_v27, %v2454_v28 }
  0xba   :  { %1473 = vmatpush.bf16.msrb.mxu0 %v2425_v52  ;;  %1495 = vmatpush.bf16.msra.mxu1 %v2093_v53  ;;  %v2647_v52 = vld [vmem:[#allocation8 + $0x178] sm:$0xf0]  ;;  %v1893_v53 = vor.u32 %v2604_v40, %v1892_v39  ;;  %v2541_v56 = vor.u32 %v2762_v47, %v2538_v48  ;;  %v2678_v36 = vld [vmem:[#allocation8 + $0x274] sm:$0xf]  ;;  %v2426_v39 = vld [vmem:[#allocation8 + $0x44c] sm:$0xf0] }
  0xbb   :  { %v2069_v60 = vor.u32 %v2647_v52, %v2068_v51  ;;  %v2671_v48 = vld [vmem:[#allocation8 + $0x23c] sm:$0xf]  ;;  %v2398_v51 = vld [vmem:[#allocation8 + $0x414] sm:$0xf0]  ;;  %v1957_v52 = vor.u32 %v2619_v43, %v1956_v42  ;;  %v2266_v42 = vld [vmem:[#allocation8 + $0x304] sm:$0xf0] }
  0xbd   :  { %1446 = vmatpush.bf16.msrb.mxu2 %v2005_v58  ;;  %1459 = vmatpush.bf16.msrb.mxu3 %v2229_v59  ;;  %v2286_v58 = vld [vmem:[#allocation8 + $0x334] sm:$0xf0]  ;;  %v1953_v59 = vor.u32 %v2615_v49, %v1950_v50  ;;  %v2727_v50 = vld [vmem:[#allocation8 + $0x3fc] sm:$0xf] }
  0xbe   :  { %1474 = vmatpush.bf16.msrb.mxu0 %v2397_v0  ;;  %1496 = vmatpush.bf16.msra.mxu1 %v2065_v1  ;;  %v1922_v0 = vld [vmem:[#allocation8 + $0x5c] sm:$0xf0]  ;;  %v2040_v1 = vld [vmem:[#allocation8 + $0x128] sm:$0xf]  ;;  %v2289_v5 = vor.u32 %v2699_v57, %v2286_v58  ;;  %v2174_v49 = vld [vmem:[#allocation8 + $0x254] sm:$0xf0] }
  0xbf   :  { %v2041_v10 = vor.u32 %v2640_v2, %v2040_v1  ;;  %v2689_v57 = vld [vmem:[#allocation8 + $0x2c8] sm:$0xf0]  ;;  %v2177_v58 = vor.u32 %v2671_v48, %v2174_v49  ;;  %v1900_v2 = vld [vmem:[#allocation8 + $0x10] sm:$0xf]  ;;  %v2488_v48 = vld [vmem:[#allocation8 + $0x4a8] sm:$0xf] }
  0xc0   :  { %1399 = vmatmul.bf16.vlgmr.msra.gmra.mxu3 %v3024_v3  ;;  %2583 = vmatmul.msk.bf16.vlgmr.msra.gmra.mxu2 %vm1335_vm2, %v3032_v26  ;;  %v2752_v49 = vld [vmem:[#allocation8 + $0x4c0] sm:$0xf0] }
  0xc1   :  { %1447 = vmatpush.bf16.msrb.mxu2 %v1977_v8  ;;  %1460 = vmatpush.bf16.msrb.mxu3 %v2201_v9  ;;  %v2258_v8 = vld [vmem:[#allocation8 + $0x2fc] sm:$0xf0]  ;;  %v1925_v9 = vor.u32 %v2608_v63, %v1922_v0 }
  0xc2   :  { %1475 = vmatpush.bf16.msrb.mxu0 %v2369_v14  ;;  %1497 = vmatpush.bf16.msra.mxu1 %v2037_v15  ;;  %v1894_v14 = vld [vmem:[#allocation8 + $0x24] sm:$0xf0]  ;;  %v2012_v15 = vld [vmem:[#allocation8 + $0xf0] sm:$0xf]  ;;  %v2261_v19 = vor.u32 %v2692_v7, %v2258_v8  ;;  %v2370_v63 = vld [vmem:[#allocation8 + $0x3dc] sm:$0xf0] }
  0xc3   :  { %v1897_v22 = vor.u32 %v2601_v13, %v1894_v14  ;;  %v2013_v23 = vor.u32 %v2633_v16, %v2012_v15  ;;  %v2682_v7 = vld [vmem:[#allocation8 + $0x290] sm:$0xf0]  ;;  %v2118_v13 = vld [vmem:[#allocation8 + $0x1e4] sm:$0xf0]  ;;  %v2713_v14 = vld [vmem:[#allocation8 + $0x38c] sm:$0xf] }
  0xc4   :  { %v2342_v15 = vld [vmem:[#allocation8 + $0x3a4] sm:$0xf0] }
  0xc5   :  { %1448 = vmatpush.bf16.msrb.mxu2 %v1949_v20  ;;  %1461 = vmatpush.bf16.msrb.mxu3 %v2173_v21  ;;  %v2485_v20 = vor.u32 %v2748_v11, %v2482_v12  ;;  %v2685_v21 = vld [vmem:[#allocation8 + $0x2ac] sm:$0xf]  ;;  %v2322_v11 = vld [vmem:[#allocation8 + $0x374] sm:$0xf0]  ;;  %v2345_v28 = vor.u32 %v2713_v14, %v2342_v15  ;;  %v2738_v15 = vld [vmem:[#allocation8 + $0x450] sm:$0xf0] }
  0xc6   :  { %1476 = vmatpush.bf16.msrb.mxu0 %v2341_v30  ;;  %1498 = vmatpush.bf16.msra.mxu1 %v2009_v31  ;;  %v1984_v30 = vld [vmem:[#allocation8 + $0xb8] sm:$0xf]  ;;  %v2626_v31 = vld [vmem:[#allocation8 + $0xd0] sm:$0xf0]  ;;  %v2233_v34 = vor.u32 %v2685_v21, %v2230_v24  ;;  %v2657_v12 = vld [vmem:[#allocation8 + $0x1cc] sm:$0xf] }
  0xc7   :  { %v1985_v40 = vor.u32 %v2626_v31, %v1984_v30  ;;  %v2773_v24 = vld [vmem:[#allocation8 + $0x568] sm:$0xf0]  ;;  %v2121_v27 = vor.u32 %v2657_v12, %v2118_v13  ;;  %v2294_v30 = vld [vmem:[#allocation8 + $0x33c] sm:$0xf0]  ;;  %v2432_v14 = vld [vmem:[#allocation8 + $0x438] sm:$0xf] }
  0xc8   :  { %2584 = vmatmul.msk.bf16.vlgmr.msrb.gmra.mxu1 %vm1335_vm2, %v3032_v26 }
  0xc9   :  { %1449 = vmatpush.bf16.msrb.mxu2 %v1921_v37  ;;  %1462 = vmatpush.bf16.msrb.mxu3 %v2145_v38  ;;  %v2202_v37 = vld [vmem:[#allocation8 + $0x28c] sm:$0xf0]  ;;  %v2734_v38 = vld [vmem:[#allocation8 + $0x434] sm:$0xf] }
  0xca   :  { %1541 = vmatpush.bf16.msra.mxu0 %v2569_v33  ;;  %1499 = vmatpush.bf16.msra.mxu1 %v1981_v45  ;;  %v2703_v33 = vld [vmem:[#allocation8 + $0x338] sm:$0xf0]  ;;  %v2696_v45 = vld [vmem:[#allocation8 + $0x300] sm:$0xf0]  ;;  %v2429_v47 = vor.u32 %v2734_v38, %v2426_v39  ;;  %v2152_v39 = vld [vmem:[#allocation8 + $0x208] sm:$0xf] }
  0xcb   :  { %1477 = vmatmul.bf16.vlgmr.msrb.gmra.mxu0 %v3030_v25  ;;  %v2293_v41 = vor.u32 %v2703_v33, %v2292_v32  ;;  %v2651_v32 = vld [vmem:[#allocation8 + $0x19c] sm:$0xf] }
  0xcd   :  { %1450 = vmatpush.bf16.msrb.mxu2 %v1893_v53  ;;  %1463 = vmatpush.bf16.msrb.mxu3 %v2117_v54  ;;  %v2265_v53 = vor.u32 %v2696_v45, %v2264_v44  ;;  %v1928_v54 = vld [vmem:[#allocation8 + $0x48] sm:$0xf]  ;;  %v2644_v45 = vld [vmem:[#allocation8 + $0x164] sm:$0xf] }
  0xce   :  { %1547 = vmatpush.bf16.msrb.mxu0 %v2097_v46  ;;  %1500 = vmatpush.bf16.msra.mxu1 %v1953_v59  ;;  %v2205_v46 = vor.u32 %v2678_v36, %v2202_v37  ;;  %v2401_v59 = vor.u32 %v2727_v50, %v2398_v51  ;;  %v2516_v36 = vld [vmem:[#allocation8 + $0x4e0] sm:$0xf]  ;;  %v2759_v37 = vld [vmem:[#allocation8 + $0x4f8] sm:$0xf0]  ;;  %v2124_v51 = vld [vmem:[#allocation8 + $0x1d0] sm:$0xf] }
  0xcf   :  { %v2517_v44 = vor.u32 %v2759_v37, %v2516_v36  ;;  %v2616_v36 = vld [vmem:[#allocation8 + $0x84] sm:$0xf]  ;;  %v1958_v37 = vld [vmem:[#allocation8 + $0x9c] sm:$0xf0] }
  0xd0   :  { %1451 = vmatmul.bf16.vlgmr.msrb.gmra.mxu2 %v3024_v3  ;;  %1464 = vmatmul.bf16.vlgmr.msrb.gmra.mxu3 %v3026_v4 }
  0xd1   :  { %1508 = vmatpush.bf16.msra.mxu2 %v2317_v55  ;;  %1521 = vmatpush.bf16.msra.mxu3 %v2541_v56  ;;  %v2612_v55 = vld [vmem:[#allocation8 + $0x60] sm:$0xf0]  ;;  %v2236_v56 = vld [vmem:[#allocation8 + $0x2b0] sm:$0xf] }
  0xd2   :  { %1548 = vmatpush.bf16.msrb.mxu0 %v2069_v60  ;;  %1501 = vmatpush.bf16.msra.mxu1 %v1925_v9  ;;  %v2664_v60 = vld [vmem:[#allocation8 + $0x204] sm:$0xf]  ;;  %v1929_v0 = vor.u32 %v2612_v55, %v1928_v54  ;;  %v2237_v1 = vor.u32 %v2689_v57, %v2236_v56  ;;  %v2373_v9 = vor.u32 %v2720_v62, %v2370_v63  ;;  %v2238_v54 = vld [vmem:[#allocation8 + $0x2cc] sm:$0xf0]  ;;  %v2763_v55 = vld [vmem:[#allocation8 + $0x51c] sm:$0xf] }
  0xd3   :  { %v2149_v8 = vor.u32 %v2664_v60, %v2146_v61  ;;  %v2546_v56 = vld [vmem:[#allocation8 + $0x534] sm:$0xf0]  ;;  %v2637_v60 = vld [vmem:[#allocation8 + $0x12c] sm:$0xf]  ;;  %v2042_v61 = vld [vmem:[#allocation8 + $0x144] sm:$0xf0] }
  0xd4   :  { %v2549_v63 = vor.u32 %v2763_v55, %v2546_v56  ;;  %v2717_v55 = vld [vmem:[#allocation8 + $0x3a8] sm:$0xf0]  ;;  %v2728_v56 = vld [vmem:[#allocation8 + $0x404] sm:$0xf] }
  0xd5   :  { %1509 = vmatpush.bf16.msra.mxu2 %v2289_v5  ;;  %1522 = vmatpush.bf16.msra.mxu3 %v2513_v6  ;;  %v2605_v5 = vld [vmem:[#allocation8 + $0x28] sm:$0xf0]  ;;  %v2208_v6 = vld [vmem:[#allocation8 + $0x278] sm:$0xf] }
  0xd6   :  { %1549 = vmatpush.bf16.msrb.mxu0 %v2041_v10  ;;  %1502 = vmatpush.bf16.msra.mxu1 %v1897_v22  ;;  %v2707_v10 = vld [vmem:[#allocation8 + $0x35c] sm:$0xf]  ;;  %v1901_v16 = vor.u32 %v2605_v5, %v1900_v2  ;;  %v2209_v17 = vor.u32 %v2682_v7, %v2208_v6  ;;  %v2210_v5 = vld [vmem:[#allocation8 + $0x294] sm:$0xf0]  ;;  %v2756_v6 = vld [vmem:[#allocation8 + $0x4e4] sm:$0xf] }
  0xd7   :  { %v2325_v21 = vor.u32 %v2707_v10, %v2322_v11  ;;  %v2675_v22 = vld [vmem:[#allocation8 + $0x258] sm:$0xf0]  ;;  %v2518_v7 = vld [vmem:[#allocation8 + $0x4fc] sm:$0xf0]  ;;  %v2630_v10 = vld [vmem:[#allocation8 + $0xf4] sm:$0xf] }
  0xd8   :  { %v2679_v2 = vld [vmem:[#allocation8 + $0x27c] sm:$0xf]  ;;  %v2014_v11 = vld [vmem:[#allocation8 + $0x10c] sm:$0xf0]  ;;  %v2521_v13 = vor.u32 %v2756_v6, %v2518_v7 }
  0xd9   :  { %1510 = vmatpush.bf16.msra.mxu2 %v2261_v19  ;;  %1523 = vmatpush.bf16.msra.mxu3 %v2485_v20  ;;  %v2766_v19 = vld [vmem:[#allocation8 + $0x530] sm:$0xf0]  ;;  %v2180_v20 = vld [vmem:[#allocation8 + $0x240] sm:$0xf]  ;;  %v2213_v12 = vor.u32 %v2679_v2, %v2210_v5  ;;  %v1902_v2 = vld [vmem:[#allocation8 + $0x2c] sm:$0xf0] }
  0xda   :  { %1550 = vmatpush.bf16.msrb.mxu0 %v2013_v23  ;;  %1560 = vmatpush.bf16.msrb.mxu1 %v2321_v29  ;;  %v2572_v23 = vld [vmem:[#allocation8 + $0x550] sm:$0xf]  ;;  %v2700_v29 = vld [vmem:[#allocation8 + $0x324] sm:$0xf]  ;;  %v2545_v31 = vor.u32 %v2766_v19, %v2544_v18  ;;  %v2181_v33 = vor.u32 %v2675_v22, %v2180_v20  ;;  %v2749_v18 = vld [vmem:[#allocation8 + $0x4ac] sm:$0xf]  ;;  %v2017_v20 = vor.u32 %v2630_v10, %v2014_v11 }
  0xdb   :  { %1503 = vmatmul.bf16.vlgmr.msra.gmra.mxu1 %v3024_v3  ;;  %2585 = vmatmul.msk.bf16.vlgmr.msra.gmra.mxu0 %vm1335_vm2, %v3032_v26  ;;  %v2297_v38 = vor.u32 %v2700_v29, %v2294_v30  ;;  %v2490_v19 = vld [vmem:[#allocation8 + $0x4c4] sm:$0xf0]  ;;  %v2623_v22 = vld [vmem:[#allocation8 + $0xbc] sm:$0xf]  ;;  %v2665_v30 = vld [vmem:[#allocation8 + $0x20c] sm:$0xf] }
  0xdc   :  { %v2731_v29 = vld [vmem:[#allocation8 + $0x418] sm:$0xf0]  ;;  %v2104_v5 = vld [vmem:[#allocation8 + $0x1a0] sm:$0xf] }
  0xdd   :  { %1511 = vmatpush.bf16.msra.mxu2 %v2233_v34  ;;  %1524 = vmatpush.bf16.msra.mxu3 %v2457_v35  ;;  %v2573_v34 = vor.u32 %v2773_v24, %v2572_v23  ;;  %v2098_v35 = vld [vmem:[#allocation8 + $0x1b4] sm:$0xf0]  ;;  %v2711_v10 = vld [vmem:[#allocation8 + $0x378] sm:$0xf0] }
  0xde   :  { %1551 = vmatpush.bf16.msrb.mxu0 %v1985_v40  ;;  %1561 = vmatpush.bf16.msrb.mxu1 %v2293_v41  ;;  %v2668_v40 = vld [vmem:[#allocation8 + $0x220] sm:$0xf0]  ;;  %v2693_v41 = vld [vmem:[#allocation8 + $0x2ec] sm:$0xf]  ;;  %v2101_v43 = vor.u32 %v2651_v32, %v2098_v35  ;;  %v1986_v23 = vld [vmem:[#allocation8 + $0xd4] sm:$0xf0] }
  0xdf   :  { %v2269_v50 = vor.u32 %v2693_v41, %v2266_v42  ;;  %v2742_v32 = vld [vmem:[#allocation8 + $0x474] sm:$0xf]  ;;  %v2724_v41 = vld [vmem:[#allocation8 + $0x3e0] sm:$0xf0] }
  0xe0   :  { %v2658_v42 = vld [vmem:[#allocation8 + $0x1d4] sm:$0xf] }
  0xe1   :  { %1512 = vmatpush.bf16.msra.mxu2 %v2205_v46  ;;  %1525 = vmatpush.bf16.msra.mxu3 %v2429_v47  ;;  %v2153_v46 = vor.u32 %v2668_v40, %v2152_v39  ;;  %v2070_v47 = vld [vmem:[#allocation8 + $0x17c] sm:$0xf0]  ;;  %v2376_v40 = vld [vmem:[#allocation8 + $0x3c8] sm:$0xf] }
  0xe2   :  { %1552 = vmatpush.bf16.msrb.mxu0 %v1957_v52  ;;  %1562 = vmatpush.bf16.msrb.mxu1 %v2265_v53  ;;  %v2661_v52 = vld [vmem:[#allocation8 + $0x1e8] sm:$0xf0]  ;;  %v2686_v53 = vld [vmem:[#allocation8 + $0x2b4] sm:$0xf]  ;;  %v2073_v57 = vor.u32 %v2644_v45, %v2070_v47  ;;  %v2434_v45 = vld [vmem:[#allocation8 + $0x454] sm:$0xf0] }
  0xe3   :  { %v2241_v62 = vor.u32 %v2686_v53, %v2238_v54  ;;  %v2552_v47 = vld [vmem:[#allocation8 + $0x520] sm:$0xf]  ;;  %v2348_v54 = vld [vmem:[#allocation8 + $0x390] sm:$0xf] }
  0xe5   :  { %1513 = vmatpush.bf16.msra.mxu2 %v2177_v58  ;;  %1526 = vmatpush.bf16.msra.mxu3 %v2401_v59  ;;  %v2489_v58 = vor.u32 %v2752_v49, %v2488_v48  ;;  %v2125_v59 = vor.u32 %v2661_v52, %v2124_v51  ;;  %v2767_v48 = vld [vmem:[#allocation8 + $0x538] sm:$0xf0]  ;;  %v2377_v49 = vor.u32 %v2724_v41, %v2376_v40  ;;  %v1930_v51 = vld [vmem:[#allocation8 + $0x64] sm:$0xf0] }
  0xe6   :  { %1553 = vmatpush.bf16.msrb.mxu0 %v1929_v0  ;;  %1563 = vmatpush.bf16.msrb.mxu1 %v2237_v1  ;;  %v2460_v0 = vld [vmem:[#allocation8 + $0x470] sm:$0xf]  ;;  %v2745_v1 = vld [vmem:[#allocation8 + $0x488] sm:$0xf0] }
  0xe9   :  { %1514 = vmatpush.bf16.msra.mxu2 %v2149_v8  ;;  %1527 = vmatpush.bf16.msra.mxu3 %v2373_v9  ;;  %v2045_v8 = vor.u32 %v2637_v60, %v2042_v61  ;;  %v2461_v9 = vor.u32 %v2745_v1, %v2460_v0  ;;  %v2574_v60 = vld [vmem:[#allocation8 + $0x56c] sm:$0xf0]  ;;  %v2349_v0 = vor.u32 %v2717_v55, %v2348_v54  ;;  %v2602_v1 = vld [vmem:[#allocation8 + $0x14] sm:$0xf]  ;;  %v1992_v55 = vld [vmem:[#allocation8 + $0xc0] sm:$0xf] }
  0xea   :  { %1554 = vmatpush.bf16.msrb.mxu0 %v1901_v16  ;;  %1564 = vmatpush.bf16.msrb.mxu1 %v2209_v17  ;;  %v2672_v16 = vld [vmem:[#allocation8 + $0x244] sm:$0xf]  ;;  %v2182_v17 = vld [vmem:[#allocation8 + $0x25c] sm:$0xf0] }
  0xeb   :  { %v2185_v24 = vor.u32 %v2672_v16, %v2182_v17  ;;  %v2753_v16 = vld [vmem:[#allocation8 + $0x4c8] sm:$0xf0] }
  0xed   :  { %1515 = vmatpush.bf16.msra.mxu2 %v2121_v27  ;;  %1528 = vmatpush.bf16.msra.mxu3 %v2345_v28  ;;  %v2493_v27 = vor.u32 %v2749_v18, %v2490_v19  ;;  %v2404_v28 = vld [vmem:[#allocation8 + $0x400] sm:$0xf]  ;;  %v2076_v19 = vld [vmem:[#allocation8 + $0x168] sm:$0xf] }
  0xee   :  { %1612 = vmatpush.bf16.msra.mxu0 %v2325_v21  ;;  %1565 = vmatpush.bf16.msrb.mxu1 %v2181_v33  ;;  %v2433_v21 = vor.u32 %v2738_v15, %v2432_v14  ;;  %v2462_v33 = vld [vmem:[#allocation8 + $0x48c] sm:$0xf0]  ;;  %v2405_v35 = vor.u32 %v2731_v29, %v2404_v28  ;;  %v1905_v14 = vor.u32 %v2602_v1, %v1902_v2  ;;  %v2468_v29 = vld [vmem:[#allocation8 + $0x478] sm:$0xf]  ;;  %v2620_v1 = vld [vmem:[#allocation8 + $0xa0] sm:$0xf0] }
  0xef   :  { %1555 = vmatmul.bf16.vlgmr.msrb.gmra.mxu0 %v3024_v3  ;;  %v2465_v39 = vor.u32 %v2742_v32, %v2462_v33  ;;  %v2496_v15 = vld [vmem:[#allocation8 + $0x4b0] sm:$0xf]  ;;  %v2774_v32 = vld [vmem:[#allocation8 + $0x570] sm:$0xf0]  ;;  %v2188_v2 = vld [vmem:[#allocation8 + $0x248] sm:$0xf] }
  0xf0   :  { %1516 = vmatmul.bf16.vlgmr.msra.gmra.mxu2 %v3026_v4  ;;  %1529 = vmatmul.bf16.vlgmr.msra.gmra.mxu3 %v3030_v25  ;;  %v2350_v28 = vld [vmem:[#allocation8 + $0x3ac] sm:$0xf0] }
  0xf1   :  { %1573 = vmatpush.bf16.msrb.mxu2 %v2545_v31  ;;  %1593 = vmatpush.bf16.msrb.mxu3 %v2573_v34  ;;  %v2154_v31 = vld [vmem:[#allocation8 + $0x224] sm:$0xf0]  ;;  %v1989_v34 = vor.u32 %v2623_v22, %v1986_v23  ;;  %v2704_v23 = vld [vmem:[#allocation8 + $0x340] sm:$0xf0] }
  0xf2   :  { %1613 = vmatpush.bf16.msra.mxu0 %v2297_v38  ;;  %1566 = vmatpush.bf16.msrb.mxu1 %v2153_v46  ;;  %v2157_v38 = vor.u32 %v2665_v30, %v2154_v31  ;;  %v1961_v46 = vor.u32 %v2616_v36, %v1958_v37  ;;  %v2300_v22 = vld [vmem:[#allocation8 + $0x328] sm:$0xf]  ;;  %v2746_v30 = vld [vmem:[#allocation8 + $0x490] sm:$0xf0]  ;;  %v2580_v31 = vld [vmem:[#allocation8 + $0x558] sm:$0xf] }
  0xf3   :  { %v2641_v37 = vld [vmem:[#allocation8 + $0x148] sm:$0xf0]  ;;  %v2469_v40 = vor.u32 %v2746_v30, %v2468_v29  ;;  %v2581_v41 = vor.u32 %v2774_v32, %v2580_v31 }
  0xf5   :  { %1599 = vmatpush.bf16.msra.mxu3 %v2101_v43  ;;  %1574 = vmatpush.bf16.msrb.mxu2 %v2517_v44  ;;  %v2126_v43 = vld [vmem:[#allocation8 + $0x1ec] sm:$0xf0]  ;;  %v2735_v44 = vld [vmem:[#allocation8 + $0x43c] sm:$0xf] }
  0xf6   :  { %1614 = vmatpush.bf16.msra.mxu0 %v2269_v50  ;;  %1567 = vmatpush.bf16.msrb.mxu1 %v2125_v59  ;;  %v2609_v50 = vld [vmem:[#allocation8 + $0x4c] sm:$0xf]  ;;  %v2129_v52 = vor.u32 %v2658_v42, %v2126_v43  ;;  %v2437_v53 = vor.u32 %v2735_v44, %v2434_v45  ;;  %v2770_v59 = vld [vmem:[#allocation8 + $0x554] sm:$0xf]  ;;  %v2440_v42 = vld [vmem:[#allocation8 + $0x440] sm:$0xf] }
  0xf7   :  { %v1933_v61 = vor.u32 %v2609_v50, %v1930_v51  ;;  %v2577_v7 = vor.u32 %v2770_v59, %v2574_v60  ;;  %v2739_v43 = vld [vmem:[#allocation8 + $0x458] sm:$0xf0]  ;;  %v2412_v51 = vld [vmem:[#allocation8 + $0x408] sm:$0xf]  ;;  %v2384_v60 = vld [vmem:[#allocation8 + $0x3d0] sm:$0xf] }
  0xf8   :  { %v2441_v50 = vor.u32 %v2739_v43, %v2440_v42 }
  0xf9   :  { %1600 = vmatpush.bf16.msra.mxu3 %v2073_v57  ;;  %1575 = vmatpush.bf16.msrb.mxu2 %v2489_v58  ;;  %v2553_v57 = vor.u32 %v2767_v48, %v2552_v47  ;;  %v2406_v58 = vld [vmem:[#allocation8 + $0x41c] sm:$0xf0]  ;;  %v2634_v47 = vld [vmem:[#allocation8 + $0x110] sm:$0xf0]  ;;  %v2244_v48 = vld [vmem:[#allocation8 + $0x2b8] sm:$0xf] }
  0xfa   :  { %1615 = vmatpush.bf16.msra.mxu0 %v2241_v62  ;;  %1625 = vmatpush.bf16.msra.mxu1 %v2549_v63  ;;  %v2524_v62 = vld [vmem:[#allocation8 + $0x4e8] sm:$0xf]  ;;  %v2760_v63 = vld [vmem:[#allocation8 + $0x500] sm:$0xf0]  ;;  %v2409_v6 = vor.u32 %v2728_v56, %v2406_v58  ;;  %v2627_v56 = vld [vmem:[#allocation8 + $0xd8] sm:$0xf0] }
  0xfb   :  { %1568 = vmatmul.bf16.vlgmr.msrb.gmra.mxu1 %v3026_v4  ;;  %v2525_v11 = vor.u32 %v2760_v63, %v2524_v62  ;;  %v2683_v58 = vld [vmem:[#allocation8 + $0x298] sm:$0xf0]  ;;  %v1993_v62 = vor.u32 %v2627_v56, %v1992_v55 }
  0xfd   :  { %1601 = vmatpush.bf16.msra.mxu3 %v2045_v8  ;;  %1576 = vmatpush.bf16.msrb.mxu2 %v2461_v9  ;;  %v2655_v8 = vld [vmem:[#allocation8 + $0x1b8] sm:$0xf0]  ;;  %v2328_v9 = vld [vmem:[#allocation8 + $0x360] sm:$0xf] }
  0xfe   :  { %1616 = vmatpush.bf16.msra.mxu0 %v2213_v12  ;;  %1626 = vmatpush.bf16.msra.mxu1 %v2521_v13  ;;  %v2721_v12 = vld [vmem:[#allocation8 + $0x3cc] sm:$0xf]  ;;  %v2378_v13 = vld [vmem:[#allocation8 + $0x3e4] sm:$0xf0]  ;;  %v2105_v17 = vor.u32 %v2655_v8, %v2104_v5  ;;  %v2329_v18 = vor.u32 %v2711_v10, %v2328_v9  ;;  %v2676_v5 = vld [vmem:[#allocation8 + $0x260] sm:$0xf0] }
  0xff   :  { %v2718_v8 = vld [vmem:[#allocation8 + $0x3b0] sm:$0xf0]  ;;  %v2189_v10 = vor.u32 %v2676_v5, %v2188_v2 }
 0x100   :  { %2586 = vmatmul.msk.bf16.vlgmr.msrb.gmra.mxu3 %vm1335_vm2, %v3032_v26 }
 0x101   :  { %1602 = vmatpush.bf16.msra.mxu3 %v2017_v20  ;;  %1577 = vmatpush.bf16.msrb.mxu2 %v2433_v21  ;;  %v2381_v20 = vor.u32 %v2721_v12, %v2378_v13  ;;  %v2648_v21 = vld [vmem:[#allocation8 + $0x180] sm:$0xf0]  ;;  %v2613_v12 = vld [vmem:[#allocation8 + $0x68] sm:$0xf0]  ;;  %v2160_v13 = vld [vmem:[#allocation8 + $0x210] sm:$0xf] }
 0x102   :  { %1617 = vmatpush.bf16.msra.mxu0 %v2185_v24  ;;  %1627 = vmatpush.bf16.msra.mxu1 %v2493_v27  ;;  %v2497_v24 = vor.u32 %v2753_v16, %v2496_v15  ;;  %v2714_v27 = vld [vmem:[#allocation8 + $0x394] sm:$0xf]  ;;  %v2077_v33 = vor.u32 %v2648_v21, %v2076_v19 }
 0x103   :  { %v2353_v36 = vor.u32 %v2714_v27, %v2350_v28  ;;  %v2606_v19 = vld [vmem:[#allocation8 + $0x30] sm:$0xf0] }
 0x104   :  { %v2662_v21 = vld [vmem:[#allocation8 + $0x1f0] sm:$0xf0] }
 0x105   :  { %1603 = vmatpush.bf16.msra.mxu3 %v1989_v34  ;;  %1578 = vmatpush.bf16.msrb.mxu2 %v2405_v35  ;;  %v2301_v34 = vor.u32 %v2704_v23, %v2300_v22  ;;  %v2048_v35 = vld [vmem:[#allocation8 + $0x130] sm:$0xf] }
 0x106   :  { %1618 = vmatpush.bf16.msra.mxu0 %v2157_v38  ;;  %1628 = vmatpush.bf16.msra.mxu1 %v2465_v39  ;;  %v2272_v38 = vld [vmem:[#allocation8 + $0x2f0] sm:$0xf]  ;;  %v2697_v39 = vld [vmem:[#allocation8 + $0x308] sm:$0xf0]  ;;  %v2049_v44 = vor.u32 %v2641_v37, %v2048_v35 }
 0x107   :  { %v2273_v45 = vor.u32 %v2697_v39, %v2272_v38 }
 0x109   :  { %1604 = vmatpush.bf16.msra.mxu3 %v1961_v46  ;;  %1579 = vmatpush.bf16.msrb.mxu2 %v2377_v49  ;;  %v2020_v46 = vld [vmem:[#allocation8 + $0xf8] sm:$0xf]  ;;  %v2690_v49 = vld [vmem:[#allocation8 + $0x2d0] sm:$0xf0] }
 0x10a   :  { %1619 = vmatpush.bf16.msra.mxu0 %v2129_v52  ;;  %1629 = vmatpush.bf16.msra.mxu1 %v2437_v53  ;;  %v2732_v52 = vld [vmem:[#allocation8 + $0x420] sm:$0xf0]  ;;  %v2021_v53 = vor.u32 %v2634_v47, %v2020_v46  ;;  %v2245_v54 = vor.u32 %v2690_v49, %v2244_v48 }
 0x10b   :  { %v2413_v59 = vor.u32 %v2732_v52, %v2412_v51 }
 0x10d   :  { %1605 = vmatpush.bf16.msra.mxu3 %v1933_v61  ;;  %1580 = vmatpush.bf16.msrb.mxu2 %v2349_v0  ;;  %v2725_v61 = vld [vmem:[#allocation8 + $0x3e8] sm:$0xf0]  ;;  %v1964_v0 = vld [vmem:[#allocation8 + $0x88] sm:$0xf] }
 0x10e   :  { %1677 = vmatpush.bf16.msrb.mxu0 %v2553_v57  ;;  %1630 = vmatpush.bf16.msra.mxu1 %v2409_v6  ;;  %v2216_v57 = vld [vmem:[#allocation8 + $0x280] sm:$0xf]  ;;  %v2385_v6 = vor.u32 %v2725_v61, %v2384_v60  ;;  %v1965_v9 = vor.u32 %v2620_v1, %v1964_v0 }
 0x10f   :  { %1620 = vmatmul.bf16.vlgmr.msra.gmra.mxu0 %v3026_v4  ;;  %v2217_v63 = vor.u32 %v2683_v58, %v2216_v57 }
 0x110   :  { %1581 = vmatmul.bf16.vlgmr.msrb.gmra.mxu2 %v3030_v25 }
 0x111   :  { %1645 = vmatpush.bf16.msra.mxu2 %v2577_v7  ;;  %1606 = vmatpush.bf16.msra.mxu3 %v1905_v14  ;;  %v2356_v7 = vld [vmem:[#allocation8 + $0x398] sm:$0xf]  ;;  %v2669_v14 = vld [vmem:[#allocation8 + $0x228] sm:$0xf0] }
 0x112   :  { %1678 = vmatpush.bf16.msrb.mxu0 %v2525_v11  ;;  %1631 = vmatpush.bf16.msra.mxu1 %v2381_v20  ;;  %v1936_v11 = vld [vmem:[#allocation8 + $0x50] sm:$0xf]  ;;  %v2357_v15 = vor.u32 %v2718_v8, %v2356_v7  ;;  %v2132_v20 = vld [vmem:[#allocation8 + $0x1d8] sm:$0xf] }
 0x113   :  { %v1937_v16 = vor.u32 %v2613_v12, %v1936_v11  ;;  %v2133_v23 = vor.u32 %v2662_v21, %v2132_v20 }
 0x114   :  { %1607 = vmatmul.bf16.vlgmr.msra.gmra.mxu3 %v3024_v3 }
 0x115   :  { %1651 = vmatpush.bf16.msrb.mxu2 %v2105_v17  ;;  %1664 = vmatpush.bf16.msrb.mxu3 %v2329_v18  ;;  %v2161_v17 = vor.u32 %v2669_v14, %v2160_v13  ;;  %v1908_v18 = vld [vmem:[#allocation8 + $0x18] sm:$0xf] }
 0x116   :  { %1679 = vmatpush.bf16.msrb.mxu0 %v2497_v24  ;;  %1632 = vmatpush.bf16.msra.mxu1 %v2353_v36  ;;  %v1909_v22 = vor.u32 %v2606_v19, %v1908_v18  ;;  %v3065_v24 = vld [vmem:[#allocation10] sm:$0xff] }
 0x117   :  { %v421_v29 = vperm.slane %v3065_v24, 0  ;;  %v423_v0 = vperm.slane %v3065_v24, 2 }
 0x119   :  { %1652 = vmatpush.bf16.msrb.mxu2 %v2077_v33  ;;  %1665 = vmatpush.bf16.msrb.mxu3 %v2301_v34 }
 0x11a   :  { %1680 = vmatpush.bf16.msrb.mxu0 %v2469_v40  ;;  %1697 = vmatpush.bf16.msrb.mxu1 %v2581_v41 }
 0x11b   :  { %1633 = vmatmul.bf16.vlgmr.msra.gmra.mxu1 %v3030_v25 }
 0x11d   :  { %1653 = vmatpush.bf16.msrb.mxu2 %v2049_v44  ;;  %1666 = vmatpush.bf16.msrb.mxu3 %v2273_v45 }
 0x11e   :  { %1681 = vmatpush.bf16.msrb.mxu0 %v2441_v50 }
 0x120   :  { %2587 = vmatmul.msk.bf16.vlgmr.msra.gmra.mxu2 %vm1335_vm2, %v3032_v26 }
 0x121   :  { %1654 = vmatpush.bf16.msrb.mxu2 %v2021_v53  ;;  %1667 = vmatpush.bf16.msrb.mxu3 %v2245_v54 }
 0x122   :  { %1682 = vmatpush.bf16.msrb.mxu0 %v2413_v59 }
 0x125   :  { %1655 = vmatpush.bf16.msrb.mxu2 %v1993_v62  ;;  %1668 = vmatpush.bf16.msrb.mxu3 %v2217_v63  ;;  %v1348_v27 = vpop.f32.mrf.mxu0  ;;  %v1361_v28 = vpop.f32.mrf.mxu1 }
 0x126   :  { %1683 = vmatpush.bf16.msrb.mxu0 %v2385_v6  ;;  %v1349_v30 = vadd.f32 %v1348_v27, %v421_v29 }
 0x128   :  { %v1362_v33 = vadd.f32 %v1361_v28, %v1349_v30 }
 0x129   :  { %1656 = vmatpush.bf16.msrb.mxu2 %v1965_v9  ;;  %1669 = vmatpush.bf16.msrb.mxu3 %v2189_v10 }
 0x12a   :  { %1684 = vmatpush.bf16.msrb.mxu0 %v2357_v15 }
 0x12b   :  { %2588 = vmatmul.msk.bf16.vlgmr.msrb.gmra.mxu1 %vm1335_vm2, %v3032_v26 }
 0x12d   :  { %1657 = vmatpush.bf16.msrb.mxu2 %v1937_v16  ;;  %1670 = vmatpush.bf16.msrb.mxu3 %v2161_v17  ;;  %v1350_v31 = vpop.f32.mrf.mxu0  ;;  %v1363_v32 = vpop.f32.mrf.mxu1 }
 0x12e   :  { %1685 = vmatmul.bf16.vlgmr.msrb.gmra.mxu0 %v3030_v25 }
 0x131   :  { %1658 = vmatpush.bf16.msrb.mxu2 %v1909_v22  ;;  %1671 = vmatpush.bf16.msrb.mxu3 %v2133_v23 }
 0x133   :  { %v1374_v25 = vpop.f32.mrf.mxu2  ;;  %v1387_v34 = vpop.f32.mrf.mxu3 }
 0x134   :  { %1659 = vmatmul.bf16.vlgmr.msrb.gmra.mxu2 %v3024_v3  ;;  %1672 = vmatmul.bf16.vlgmr.msrb.gmra.mxu3 %v3026_v4  ;;  %v1375_v35 = vadd.f32 %v1374_v25, %v1362_v33  ;;  %v422_v3 = vperm.slane %v3065_v24, 1 }
 0x135   :  { %v1413_v36 = vpop.f32.mrf.mxu0  ;;  %v1426_v37 = vpop.f32.mrf.mxu1 }
 0x136   :  { %v1388_v26 = vadd.f32 %v1387_v34, %v1375_v35 }
 0x138   :  { %v2589_v38 = vmul.f32 -1.442695, %v1388_v26  ;;  %v424_v26 = vperm.slane %v3065_v24, 3 }
 0x13a   :  { %2785 = vpow2.f32 %v2589_v38 }
 0x13b   :  { %v1376_v39 = vpop.f32.mrf.mxu2  ;;  %v1389_v40 = vpop.f32.mrf.mxu3 }
 0x13d   :  { %v1415_v41 = vpop.f32.mrf.mxu0  ;;  %v1428_v42 = vpop.f32.mrf.mxu1 }
 0x140   :  { %v2786_v43 = vpop.eup %2785 }
 0x141   :  { %v1724_v4 = vadd.f32 1.0, %v2786_v43 }
 0x143   :  { %2787 = vrcp.f32 %v1724_v4  ;;  %v1400_v44 = vpop.f32.mrf.mxu3  ;;  %v1439_v45 = vpop.f32.mrf.mxu2  ;;  %v1742_v58 = vand.u32 2147483648, %v1724_v4  ;;  %v1740_v60 = vand.u32 2147483647, %v1724_v4  ;;  %vm1736_vm4 = vweird.f32 %v1724_v4 }
 0x144   :  { %v1401_v46 = vadd.f32 %v1400_v44, %v422_v3 }
 0x145   :  { %v1491_v49 = vpop.f32.mrf.mxu1  ;;  %v1743_v1 = vor.u32 1.1754944e-38, %v1742_v58  ;;  %vm1741_vm6 = vcmp.eq.f32.partialorder %v1740_v60, 8.507059e+37  ;;  %v425_v60 = vperm.slane %v3065_v24, 4 }
 0x146   :  { %v1414_v47 = vadd.f32 %v1413_v36, %v1401_v46 }
 0x148   :  { %v1478_v48 = vpop.f32.mrf.mxu0  ;;  %v1427_v50 = vadd.f32 %v1426_v37, %v1414_v47 }
 0x149   :  { %v2788_v51 = vpop.eup %2787 }
 0x14a   :  { %v1732_v52 = vmul.f32 %v2788_v51, %v1724_v4  ;;  %v1440_v53 = vadd.f32 %v1439_v45, %v1427_v50  ;;  %vm1737_vm3 = vweird.f32 %v2788_v51 }
 0x14b   :  { %v1402_v54 = vpop.f32.mrf.mxu3  ;;  %v1441_v55 = vpop.f32.mrf.mxu2  ;;  %vm1738_vm5 = vmor %vm1736_vm4, %vm1737_vm3 }
 0x14c   :  { %v1733_v56 = vsub.f32 1.0, %v1732_v52  ;;  %v2590_v57 = vmul.f32 -1.442695, %v1440_v53 }
 0x14d   :  { %v1493_v62 = vpop.f32.mrf.mxu1 }
 0x14e   :  { %v1734_v59 = vmul.f32 %v2788_v51, %v1733_v56  ;;  %2789 = vpow2.f32 %v2590_v57 }
 0x150   :  { %v1480_v61 = vpop.f32.mrf.mxu0  ;;  %v1735_v63 = vadd.f32 %v2788_v51, %v1734_v59 }
 0x152   :  { %v1739_v2 = vsel %vm1738_vm5, %v2788_v51, %v1735_v63 }
 0x153   :  { %v1744_v5 = vsel %vm1741_vm6, %v1743_v1, %v1739_v2  ;;  %v1452_v6 = vpop.f32.mrf.mxu2  ;;  %v1465_v7 = vpop.f32.mrf.mxu3 }
 0x154   :  { %v2790_v8 = vpop.eup %2789  ;;  %1836 = vst [vmem:[#allocation11] sm:$0xff] %v1744_v5  ;;  %v1453_v9 = vadd.f32 %v1452_v6, %v423_v0 }
 0x155   :  { %v1725_v10 = vadd.f32 1.0, %v2790_v8 }
 0x156   :  { %v1466_v11 = vadd.f32 %v1465_v7, %v1453_v9 }
 0x157   :  { %2791 = vrcp.f32 %v1725_v10  ;;  %v1757_v27 = vand.u32 2147483648, %v1725_v10  ;;  %v1755_v29 = vand.u32 2147483647, %v1725_v10  ;;  %vm1751_vm8 = vweird.f32 %v1725_v10 }
 0x158   :  { %v1479_v12 = vadd.f32 %v1478_v48, %v1466_v11  ;;  %v1504_v13 = vpop.f32.mrf.mxu1  ;;  %v1543_v14 = vpop.f32.mrf.mxu0 }
 0x159   :  { %v1758_v32 = vor.u32 1.1754944e-38, %v1757_v27  ;;  %vm1756_vm10 = vcmp.eq.f32.partialorder %v1755_v29, 8.507059e+37  ;;  %v1505_v38 = vadd.f32 %v1504_v13, %v424_v26 }
 0x15a   :  { %v1492_v15 = vadd.f32 %v1491_v49, %v1479_v12 }
 0x15b   :  { %v1454_v16 = vpop.f32.mrf.mxu2  ;;  %v1467_v17 = vpop.f32.mrf.mxu3 }
 0x15c   :  { %v2591_v18 = vmul.f32 -1.442695, %v1492_v15  ;;  %v426_v15 = vperm.slane %v3065_v24, 5 }
 0x15d   :  { %v2792_v19 = vpop.eup %2791 }
 0x15e   :  { %v1747_v20 = vmul.f32 %v2792_v19, %v1725_v10  ;;  %2793 = vpow2.f32 %v2591_v18  ;;  %vm1752_vm7 = vweird.f32 %v2792_v19 }
 0x15f   :  { %vm1753_vm9 = vmor %vm1751_vm8, %vm1752_vm7 }
 0x160   :  { %v1748_v21 = vsub.f32 1.0, %v1747_v20  ;;  %v1506_v22 = vpop.f32.mrf.mxu1  ;;  %v1545_v23 = vpop.f32.mrf.mxu0 }
 0x162   :  { %v1749_v28 = vmul.f32 %v2792_v19, %v1748_v21 }
 0x164   :  { %v2794_v30 = vpop.eup %2793  ;;  %v1750_v31 = vadd.f32 %v2792_v19, %v1749_v28 }
 0x165   :  { %v1726_v33 = vadd.f32 1.0, %v2794_v30 }
 0x166   :  { %v1754_v25 = vsel %vm1753_vm9, %v2792_v19, %v1750_v31 }
 0x167   :  { %v1759_v34 = vsel %vm1756_vm10, %v1758_v32, %v1754_v25  ;;  %2795 = vrcp.f32 %v1726_v33  ;;  %v1772_v42 = vand.u32 2147483648, %v1726_v33  ;;  %v1770_v44 = vand.u32 2147483647, %v1726_v33 }
 0x168   :  { %1837 = vst [vmem:[#allocation11 + $0x8] sm:$0xff] %v1759_v34  ;;  %vm1766_vm12 = vweird.f32 %v1726_v33 }
 0x169   :  { %v1773_v48 = vor.u32 1.1754944e-38, %v1772_v42  ;;  %vm1771_vm14 = vcmp.eq.f32.partialorder %v1770_v44, 8.507059e+37  ;;  %v427_v44 = vperm.slane %v3065_v24, 6 }
 0x16c   :  { %v1556_v35 = vpop.f32.mrf.mxu0 }
 0x16d   :  { %v2796_v36 = vpop.eup %2795  ;;  %v1557_v0 = vadd.f32 %v1556_v35, %v425_v60 }
 0x16e   :  { %v1762_v37 = vmul.f32 %v2796_v36, %v1726_v33  ;;  %vm1767_vm11 = vweird.f32 %v2796_v36 }
 0x16f   :  { %vm1768_vm13 = vmor %vm1766_vm12, %vm1767_vm11 }
 0x170   :  { %v1763_v39 = vsub.f32 1.0, %v1762_v37 }
 0x172   :  { %v1764_v4 = vmul.f32 %v2796_v36, %v1763_v39 }
 0x173   :  { %v1517_v40 = vpop.f32.mrf.mxu2  ;;  %v1530_v3 = vpop.f32.mrf.mxu3 }
 0x174   :  { %v1558_v41 = vpop.f32.mrf.mxu0  ;;  %v1518_v43 = vadd.f32 %v1517_v40, %v1505_v38  ;;  %v1765_v46 = vadd.f32 %v2796_v36, %v1764_v4 }
 0x176   :  { %v1531_v45 = vadd.f32 %v1530_v3, %v1518_v43  ;;  %v1769_v50 = vsel %vm1768_vm13, %v2796_v36, %v1765_v46 }
 0x177   :  { %v1774_v51 = vsel %vm1771_vm14, %v1773_v48, %v1769_v50 }
 0x178   :  { %v1569_v47 = vpop.f32.mrf.mxu1  ;;  %v1544_v49 = vadd.f32 %v1543_v14, %v1531_v45  ;;  %1838 = vst [vmem:[#allocation11 + $0x10] sm:$0xff] %v1774_v51 }
 0x179   :  { %v1570_v7 = vadd.f32 %v1569_v47, %v1557_v0 }
 0x17a   :  { %v2592_v52 = vmul.f32 -1.442695, %v1544_v49 }
 0x17b   :  { %v1519_v53 = vpop.f32.mrf.mxu2  ;;  %v1532_v54 = vpop.f32.mrf.mxu3 }
 0x17c   :  { %2797 = vpow2.f32 %v2592_v52 }
 0x180   :  { %v1571_v55 = vpop.f32.mrf.mxu1 }
 0x182   :  { %v2798_v56 = vpop.eup %2797 }
 0x183   :  { %v1727_v57 = vadd.f32 1.0, %v2798_v56  ;;  %v1595_v58 = vpop.f32.mrf.mxu3 }
 0x185   :  { %2799 = vrcp.f32 %v1727_v57  ;;  %v1787_v2 = vand.u32 2147483648, %v1727_v57  ;;  %v1785_v6 = vand.u32 2147483647, %v1727_v57  ;;  %vm1781_vm0 = vweird.f32 %v1727_v57 }
 0x187   :  { %v1788_v12 = vor.u32 1.1754944e-38, %v1787_v2  ;;  %vm1786_vm2 = vcmp.eq.f32.partialorder %v1785_v6, 8.507059e+37 }
 0x18b   :  { %v2800_v61 = vpop.eup %2799  ;;  %v1597_v63 = vpop.f32.mrf.mxu3 }
 0x18c   :  { %v1621_v59 = vpop.f32.mrf.mxu0  ;;  %v1777_v62 = vmul.f32 %v2800_v61, %v1727_v57  ;;  %vm1782_vm15 = vweird.f32 %v2800_v61 }
 0x18d   :  { %vm1783_vm1 = vmor %vm1781_vm0, %vm1782_vm15 }
 0x18e   :  { %v1778_v1 = vsub.f32 1.0, %v1777_v62 }
 0x190   :  { %v1779_v5 = vmul.f32 %v2800_v61, %v1778_v1 }
 0x192   :  { %v1780_v10 = vadd.f32 %v2800_v61, %v1779_v5 }
 0x193   :  { %v1582_v9 = vpop.f32.mrf.mxu2 }
 0x194   :  { %v1623_v8 = vpop.f32.mrf.mxu0  ;;  %v1583_v11 = vadd.f32 %v1582_v9, %v1570_v7  ;;  %v1784_v13 = vsel %vm1783_vm1, %v2800_v61, %v1780_v10 }
 0x195   :  { %v1789_v17 = vsel %vm1786_vm2, %v1788_v12, %v1784_v13 }
 0x196   :  { %v1596_v14 = vadd.f32 %v1595_v58, %v1583_v11  ;;  %1839 = vst [vmem:[#allocation11 + $0x18] sm:$0xff] %v1789_v17 }
 0x197   :  { %v1608_v16 = vpop.f32.mrf.mxu3 }
 0x198   :  { %v1634_v18 = vpop.f32.mrf.mxu1  ;;  %v2593_v19 = vmul.f32 -1.442695, %v1596_v14  ;;  %v1609_v20 = vadd.f32 %v1608_v16, %v426_v15 }
 0x19a   :  { %2801 = vpow2.f32 %v2593_v19  ;;  %v1622_v22 = vadd.f32 %v1621_v59, %v1609_v20 }
 0x19b   :  { %v1584_v21 = vpop.f32.mrf.mxu2 }
 0x19c   :  { %v1635_v30 = vadd.f32 %v1634_v18, %v1622_v22 }
 0x19f   :  { %v1610_v23 = vpop.f32.mrf.mxu3 }
 0x1a0   :  { %v1636_v27 = vpop.f32.mrf.mxu1  ;;  %v2802_v28 = vpop.eup %2801 }
 0x1a1   :  { %v1728_v29 = vadd.f32 1.0, %v2802_v28 }
 0x1a3   :  { %2803 = vrcp.f32 %v1728_v29  ;;  %v1647_v31 = vpop.f32.mrf.mxu2  ;;  %v1802_v38 = vand.u32 2147483648, %v1728_v29  ;;  %v1800_v41 = vand.u32 2147483647, %v1728_v29  ;;  %vm1796_vm4 = vweird.f32 %v1728_v29 }
 0x1a4   :  { %v1648_v32 = vadd.f32 %v1647_v31, %v1635_v30 }
 0x1a5   :  { %v1803_v45 = vor.u32 1.1754944e-38, %v1802_v38  ;;  %vm1801_vm6 = vcmp.eq.f32.partialorder %v1800_v41, 8.507059e+37 }
 0x1a6   :  { %v2594_v33 = vmul.f32 -1.442695, %v1648_v32 }
 0x1a8   :  { %v1699_v34 = vpop.f32.mrf.mxu1  ;;  %2805 = vpow2.f32 %v2594_v33 }
 0x1a9   :  { %v2804_v35 = vpop.eup %2803 }
 0x1aa   :  { %v1792_v26 = vmul.f32 %v2804_v35, %v1728_v29  ;;  %vm1797_vm3 = vweird.f32 %v2804_v35 }
 0x1ab   :  { %v1686_v25 = vpop.f32.mrf.mxu0  ;;  %v1649_v36 = vpop.f32.mrf.mxu2  ;;  %vm1798_vm5 = vmor %vm1796_vm4, %vm1797_vm3 }
 0x1ac   :  { %v1793_v37 = vsub.f32 1.0, %v1792_v26 }
 0x1ae   :  { %v2806_v39 = vpop.eup %2805  ;;  %v1794_v40 = vmul.f32 %v2804_v35, %v1793_v37 }
 0x1af   :  { %v1729_v42 = vadd.f32 1.0, %v2806_v39 }
 0x1b0   :  { %v1701_v3 = vpop.f32.mrf.mxu1  ;;  %v1795_v4 = vadd.f32 %v2804_v35, %v1794_v40 }
 0x1b1   :  { %2807 = vrcp.f32 %v1729_v42  ;;  %v1817_v57 = vand.u32 2147483648, %v1729_v42  ;;  %v1815_v60 = vand.u32 2147483647, %v1729_v42  ;;  %vm1811_vm8 = vweird.f32 %v1729_v42 }
 0x1b2   :  { %v1799_v46 = vsel %vm1798_vm5, %v2804_v35, %v1795_v4 }
 0x1b3   :  { %v1688_v43 = vpop.f32.mrf.mxu0  ;;  %v1804_v47 = vsel %vm1801_vm6, %v1803_v45, %v1799_v46  ;;  %v1818_v63 = vor.u32 1.1754944e-38, %v1817_v57  ;;  %vm1816_vm10 = vcmp.eq.f32.partialorder %v1815_v60, 8.507059e+37 }
 0x1b4   :  { %1840 = vst [vmem:[#allocation11 + $0x20] sm:$0xff] %v1804_v47 }
 0x1b7   :  { %v1660_v48 = vpop.f32.mrf.mxu2  ;;  %v1673_v49 = vpop.f32.mrf.mxu3 }
 0x1b8   :  { %v1661_v50 = vadd.f32 %v1660_v48, %v427_v44  ;;  %v2808_v52 = vpop.eup %2807 }
 0x1b9   :  { %v1807_v53 = vmul.f32 %v2808_v52, %v1729_v42  ;;  %vm1812_vm7 = vweird.f32 %v2808_v52 }
 0x1ba   :  { %v1674_v51 = vadd.f32 %v1673_v49, %v1661_v50  ;;  %vm1813_vm9 = vmor %vm1811_vm8, %vm1812_vm7 }
 0x1bb   :  { %v1808_v55 = vsub.f32 1.0, %v1807_v53 }
 0x1bc   :  { %v1687_v54 = vadd.f32 %v1686_v25, %v1674_v51 }
 0x1bd   :  { %v1809_v24 = vmul.f32 %v2808_v52, %v1808_v55 }
 0x1be   :  { %v1700_v56 = vadd.f32 %v1699_v34, %v1687_v54 }
 0x1bf   :  { %v1662_v58 = vpop.f32.mrf.mxu2  ;;  %v1675_v59 = vpop.f32.mrf.mxu3  ;;  %v1810_v62 = vadd.f32 %v2808_v52, %v1809_v24 }
 0x1c0   :  { %v2595_v61 = vmul.f32 -1.442695, %v1700_v56 }
 0x1c1   :  { %v1814_v0 = vsel %vm1813_vm9, %v2808_v52, %v1810_v62 }
 0x1c2   :  { %2809 = vpow2.f32 %v2595_v61  ;;  %v1819_v1 = vsel %vm1816_vm10, %v1818_v63, %v1814_v0 }
 0x1c3   :  { %1841 = vst [vmem:[#allocation11 + $0x28] sm:$0xff] %v1819_v1 }
 0x1c8   :  { %v2810_v2 = vpop.eup %2809 }
 0x1c9   :  { %v1730_v5 = vadd.f32 1.0, %v2810_v2 }
 0x1cb   :  { %2811 = vrcp.f32 %v1730_v5  ;;  %v1832_v9 = vand.u32 2147483648, %v1730_v5  ;;  %v1830_v11 = vand.u32 2147483647, %v1730_v5  ;;  %vm1826_vm12 = vweird.f32 %v1730_v5 }
 0x1cd   :  { %v1833_v13 = vor.u32 1.1754944e-38, %v1832_v9  ;;  %vm1831_vm14 = vcmp.eq.f32.partialorder %v1830_v11, 8.507059e+37 }
 0x1d1   :  { %v2812_v6 = vpop.eup %2811 }
 0x1d2   :  { %v1822_v7 = vmul.f32 %v2812_v6, %v1730_v5  ;;  %vm1827_vm11 = vweird.f32 %v2812_v6 }
 0x1d3   :  { %vm1828_vm13 = vmor %vm1826_vm12, %vm1827_vm11 }
 0x1d4   :  { %v1823_v8 = vsub.f32 1.0, %v1822_v7 }
 0x1d6   :  { %v1824_v10 = vmul.f32 %v2812_v6, %v1823_v8 }
 0x1d8   :  { %v1825_v12 = vadd.f32 %v2812_v6, %v1824_v10 }
 0x1da   :  { %v1829_v14 = vsel %vm1828_vm13, %v2812_v6, %v1825_v12 }
 0x1db   :  { %v1834_v15 = vsel %vm1831_vm14, %v1833_v13, %v1829_v14 }
 0x1dc   :  { %1842 = vst [vmem:[#allocation11 + $0x30] sm:$0xff] %v1834_v15 }
 0x1dd   :  { %1853 = dma.vmem_to_hbm [thread:$0]  %s1849_s4, 896, %s1851_s21, [#allocation4]  }
 0x1de   :  { %2963 = dma.done.wait [#allocation4], 896  }
 0x1df   :  { %2964 = vsyncadd [#allocation4], 4294966400 }
 0x1e0   :  { %1858 = vsyncpa [#allocation3], 1 }
 0x1e1   :  { %1859 = vsyncpa [#allocation6], 1 }
 0x1e2   :  { %1860 = vsyncpa [#allocation9], 1 }
 0x1e3   :  { %1861 = vsyncpa [#allocation4], 1 }

</bundles_post_ra>
